<compile_context>
chip_gen: v7x
topology: tpu7x:2x2x1
jax: 0.10.0
libtpu: 0.0.40
codegen_flags: <defaults>
</compile_context>

<pallas_src>
from functools import partial

import jax
import jax.numpy as jnp
import numpy as np
from jax import lax
from jax.experimental import pallas as pl
from jax.experimental.pallas import tpu as pltpu

HIDDEN_DIM = 50
EMBEDDING_DIM = 50
N_LAYERS = 2
DROPOUT_P = 0.3  # unused at inference (nn.Dropout is identity in eval mode)

HP = 128           # hidden dim padded to one full lane width
GW = 3 * HP        # stacked gate width per layer: [ r | z | n ]
BP_MIN = 8         # sublane granularity for the batch dim
TIME_CHUNK = 64    # timesteps of gi0 staged in VMEM per grid step


# ----------------------------------------------------------------------------
# Pallas kernel: one grid step = one time chunk of the skewed 2-layer GRU.
# ----------------------------------------------------------------------------
def gru_kernel(maxlen_ref,            # scalar prefetch, SMEM (1,) int32
               lens_ref,              # (Bp, HP) int32 (length broadcast over lanes)
               gi0_ref,               # (Tc, Bp, GW)  layer-0 input gates (precomputed)
               wbig_ref,              # (2*HP, 3*GW)  block-diag fused recurrent weights
               ball_ref,              # (1, 3*GW)     stacked recurrent-side biases
               out_ref,               # (Bp, HP) f32
               h0_scr, h1_scr):       # VMEM (Bp, HP) f32 carries across chunks
    Bp, _ = out_ref.shape
    Tc = gi0_ref.shape[0]

    chunk = pl.program_id(0)
    n_chunks = pl.num_programs(0)
    n_steps = maxlen_ref[0]            # max(lengths): skip fully-padded timesteps
    base = chunk * Tc                  # global time of local step 0

    @pl.when(chunk == 0)
    def _init():
        h0_scr[...] = jnp.zeros_like(h0_scr)
        h1_scr[...] = jnp.zeros_like(h1_scr)

    # Hoist loop-invariant loads and broadcasts out of the recurrence
    # (JAX does not CSE broadcast_in_dim -> broadcast the biases once).
    wbig = wbig_ref[...]
    ball = jnp.broadcast_to(ball_ref[...], (Bp, 3 * GW))
    lens = lens_ref[...]
    cdt = wbig.dtype                   # MXU input dtype (f32 or bf16)

    def gates(gi, gh, h_prev):
        # PyTorch gate order r, z, n at static 128-lane-aligned slices.
        # r and z sigmoids fused into one 2*HP-wide EUP call.
        rz = jax.nn.sigmoid(gi[:, :2 * HP] + gh[:, :2 * HP])
        r = rz[:, :HP]
        z = rz[:, HP:]
        n = jnp.tanh(gi[:, 2 * HP:] + r * gh[:, 2 * HP:])
        return (1.0 - z) * n + z * h_prev

    def skewed_step(t, carry):
        h0, h1 = carry                 # h0: after time g-1, h1: after time g-2
        g = base + t                   # layer-0 time of this iteration

        # ONE fused MXU matmul per step: [h0|h1] @ blockdiag(whh0, wih1, whh1).
        # NOTE: if a bundle dump shows the (256, 1152) RHS re-pushed each step,
        # stage it once via pltpu.matmul_push_rhs / matmul_acc_lhs / matmul_pop.
        hcat = jnp.concatenate([h0, h1], axis=1).astype(cdt)
        gall = jnp.dot(hcat, wbig, preferred_element_type=jnp.float32) + ball
        gh0 = gall[:, 0:GW]
        gi1 = gall[:, GW:2 * GW]
        gh1 = gall[:, 2 * GW:3 * GW]

        # Layer 0 at time g (input projection precomputed in the wrapper).
        gi0 = gi0_ref[t].astype(jnp.float32)
        h0 = jnp.where(lens > g, gates(gi0, gh0, h0), h0)

        # Layer 1 at time g-1 (skewed), using the *carried* h0 / h1.
        act1 = jnp.logical_and(lens >= g, g >= 1)
        h1 = jnp.where(act1, gates(gi1, gh1, h1), h1)
        return h0, h1

    # Only iterations with live layer-0 work in this chunk.
    n_local = jnp.clip(n_steps - base, 0, Tc)
    h0, h1 = lax.fori_loop(0, n_local, skewed_step, (h0_scr[...], h1_scr[...]))

    h0_scr[...] = h0
    h1_scr[...] = h1

    # Last chunk: drain the skew (layer-1 at time n_steps-1) and store once.
    @pl.when(chunk == n_chunks - 1)
    def _finish():
        hcat = jnp.concatenate([h0, h1], axis=1).astype(cdt)
        gall = jnp.dot(hcat, wbig, preferred_element_type=jnp.float32) + ball
        gi1 = gall[:, GW:2 * GW]
        gh1 = gall[:, 2 * GW:3 * GW]
        act = jnp.logical_and(lens >= n_steps, n_steps >= 1)
        out_ref[...] = jnp.where(act, gates(gi1, gh1, h1), h1)


# ----------------------------------------------------------------------------
# Parameter layout helpers (gate stacking, lane padding, bias folding)
# ----------------------------------------------------------------------------
def _place_gates(w, in_dim_p):
    """w: (3, in_dim, H) -> (in_dim_p, GW) with gate g at lanes [g*HP, g*HP+H)."""
    _, in_dim, h = w.shape
    out = jnp.zeros((in_dim_p, GW), jnp.float32)
    for g in range(3):
        out = out.at[:in_dim, g * HP:g * HP + h].set(w[g])
    return out


def _place_bias(b_r, b_z, b_n):
    out = jnp.zeros((1, GW), jnp.float32)
    if b_r is not None:
        out = out.at[0, 0:b_r.shape[-1]].set(b_r.reshape(-1))
    if b_z is not None:
        out = out.at[0, HP:HP + b_z.shape[-1]].set(b_z.reshape(-1))
    if b_n is not None:
        out = out.at[0, 2 * HP:2 * HP + b_n.shape[-1]].set(b_n.reshape(-1))
    return out


# ----------------------------------------------------------------------------
# Wrapper
# ----------------------------------------------------------------------------
@partial(jax.jit, static_argnames=("compute_dtype",))
def rnn_model_forward(x_bte, lengths, params, compute_dtype=jnp.float32):
    """x_bte: [B, T, E] float32 padded embeddings; lengths: [B] int32."""
    wih0, whh0, bih0, bhh0, wih1, whh1, bih1, bhh1 = params
    B, T, E = x_bte.shape
    H = wih0.shape[-1]
    Bp = max(BP_MIN, ((B + BP_MIN - 1) // BP_MIN) * BP_MIN)
    Tc = min(TIME_CHUNK, T)
    n_chunks = (T + Tc - 1) // Tc
    T_pad = n_chunks * Tc

    # Gate-stacked, 128-lane-aligned weights.
    wih0_p = _place_gates(wih0, E)      # used only in the XLA-side input projection
    whh0_p = _place_gates(whh0, HP)
    wih1_p = _place_gates(wih1, HP)
    whh1_p = _place_gates(whh1, HP)

    # Block-diagonal fused recurrent weight: [h0|h1] @ wbig -> [gh0 | gi1 | gh1].
    wbig = jnp.zeros((2 * HP, 3 * GW), jnp.float32)
    wbig = wbig.at[:HP, 0:GW].set(whh0_p)
    wbig = wbig.at[:HP, GW:2 * GW].set(wih1_p)
    wbig = wbig.at[HP:, 2 * GW:3 * GW].set(whh1_p)
    wbig = wbig.astype(compute_dtype)

    # Biases: r/z biases folded (b_ih + b_hh); n-gate b_hh kept separate since
    # it sits inside r * (...).  Recurrent-side biases stacked to one tensor.
    b0_fold = _place_bias(bih0[0] + bhh0[0], bih0[1] + bhh0[1], bih0[2])
    bhh0n_p = _place_bias(None, None, bhh0[2])
    bi1_p = _place_bias(bih1[0] + bhh1[0], bih1[1] + bhh1[1], bih1[2])
    bhh1n_p = _place_bias(None, None, bhh1[2])
    ball = jnp.concatenate([bhh0n_p, bi1_p, bhh1n_p], axis=1)   # (1, 3*GW), f32

    # Hoisted layer-0 input projection. Transpose x to time-major FIRST so the
    # transpose moves E=50-wide rows instead of 384-wide gi0 rows.
    x_tb = x_bte.astype(jnp.float32).transpose(1, 0, 2).reshape(T * B, E)
    gi0 = jnp.dot(x_tb, wih0_p, preferred_element_type=jnp.float32) + b0_fold
    gi0 = gi0.reshape(T, B, GW)
    gi0 = jnp.pad(gi0, ((0, T_pad - T), (0, Bp - B), (0, 0)))
    gi0 = gi0.astype(compute_dtype)

    lens_p = jnp.zeros((Bp,), jnp.int32).at[:B].set(lengths.astype(jnp.int32))
    lens_p = jnp.broadcast_to(lens_p[:, None], (Bp, HP))
    max_len = jnp.max(lengths).astype(jnp.int32).reshape(1)

    out = pl.pallas_call(
        gru_kernel,
        out_shape=jax.ShapeDtypeStruct((Bp, HP), jnp.float32),
        grid_spec=pltpu.PrefetchScalarGridSpec(
            num_scalar_prefetch=1,
            grid=(n_chunks,),
            in_specs=[
                pl.BlockSpec((Bp, HP), lambda c, ml: (0, 0)),          # lengths
                # Streamed time chunk; default Buffered(2) double-buffers the
                # next chunk's DMA behind the recurrence compute.
                pl.BlockSpec((Tc, Bp, GW), lambda c, ml: (c, 0, 0)),   # gi0 chunk
                pl.BlockSpec((2 * HP, 3 * GW), lambda c, ml: (0, 0)),  # fused weights
                pl.BlockSpec((1, 3 * GW), lambda c, ml: (0, 0)),       # stacked biases
            ],
            out_specs=pl.BlockSpec((Bp, HP), lambda c, ml: (0, 0)),
            scratch_shapes=[pltpu.VMEM((Bp, HP), jnp.float32),   # h0 carry
                            pltpu.VMEM((Bp, HP), jnp.float32)],  # h1 carry
        ),
        compiler_params=pltpu.CompilerParams(
            dimension_semantics=("arbitrary",),      # recurrence -> sequential
            vmem_limit_bytes=32 * 1024 * 1024),
    )(max_len, lens_p, gi0, wbig, ball)

    # self.dropout(hidden[-1]): identity at inference (eval mode).
    return out[:B, :H]


# ----------------------------------------------------------------------------
# Deterministic parameter init (PyTorch GRU default: U(-1/sqrt(H), 1/sqrt(H)))
# ----------------------------------------------------------------------------
def init_params(key, embedding_dim, hidden_dim):
    k = 1.0 / np.sqrt(hidden_dim)
    keys = jax.random.split(key, 8)
    u = lambda kk, shape: jax.random.uniform(kk, shape, jnp.float32, -k, k)
    wih0 = u(keys[0], (3, embedding_dim, hidden_dim))
    whh0 = u(keys[1], (3, hidden_dim, hidden_dim))
    bih0 = u(keys[2], (3, 1, hidden_dim))
    bhh0 = u(keys[3], (3, 1, hidden_dim))
    wih1 = u(keys[4], (3, hidden_dim, hidden_dim))
    whh1 = u(keys[5], (3, hidden_dim, hidden_dim))
    bih1 = u(keys[6], (3, 1, hidden_dim))
    bhh1 = u(keys[7], (3, 1, hidden_dim))
    return (wih0, whh0, bih0, bhh0, wih1, whh1, bih1, bhh1)


# ----------------------------------------------------------------------------
# Pure-JAX reference (for correctness check)
# ----------------------------------------------------------------------------
def rnn_model_ref(x_bte, lengths, params):
    wih0, whh0, bih0, bhh0, wih1, whh1, bih1, bhh1 = params
    B, T, E = x_bte.shape
    H = wih0.shape[-1]

    def cell(inp, h, wih, whh, bih, bhh):
        r = jax.nn.sigmoid(inp @ wih[0] + bih[0] + h @ whh[0] + bhh[0])
        z = jax.nn.sigmoid(inp @ wih[1] + bih[1] + h @ whh[1] + bhh[1])
        n = jnp.tanh(inp @ wih[2] + bih[2] + r * (h @ whh[2] + bhh[2]))
        return (1.0 - z) * n + z * h

    h0 = jnp.zeros((B, H), jnp.float32)
    h1 = jnp.zeros((B, H), jnp.float32)
    for t in range(T):
        xt = x_bte[:, t, :]
        active = (lengths.reshape(B, 1) > t)
        h0 = jnp.where(active, cell(xt, h0, wih0, whh0, bih0, bhh0), h0)
        h1 = jnp.where(active, cell(h0, h1, wih1, whh1, bih1, bhh1), h1)
    return h1


if __name__ == "__main__":
    key = jax.random.PRNGKey(0)
    kp, kx = jax.random.split(key)

    B, T = 4, 8
    params = init_params(kp, EMBEDDING_DIM, HIDDEN_DIM)
    x = jax.random.normal(kx, (B, T, EMBEDDING_DIM), jnp.float32)
    lengths = jnp.array([8, 5, 3, 7], jnp.int32)  # variable-length (packed) seqs

    ref = rnn_model_ref(x, lengths, params)

    # f32 path: exact parity with the reference.
    out = jax.block_until_ready(rnn_model_forward(x, lengths, params))
    np.testing.assert_allclose(np.asarray(out), np.asarray(ref),
                               rtol=1e-3, atol=1e-3)
    assert out.shape == (B, HIDDEN_DIM)

    # bf16 MXU-input path (v6e/v7x recommendation): f32 accumulation + f32 gate
    # math; looser tolerance accounts for the bf16 rounding of gi0/weights.
    out_bf16 = jax.block_until_ready(
        rnn_model_forward(x, lengths, params, compute_dtype=jnp.bfloat16))
    np.testing.assert_allclose(np.asarray(out_bf16), np.asarray(ref),
                               rtol=5e-2, atol=5e-2)

    print("KERNEL_OK")
</pallas_src>

<mosaic_0001>
module attributes {stable_mosaic.version = 11 : i64} {
  func.func @gru_kernel(%arg0: i32, %arg1: memref<1xi32, #tpu.memory_space<smem>>, %arg2: memref<8x128xi32, #tpu.memory_space<vmem>>, %arg3: memref<8x8x384xf32, #tpu.memory_space<vmem>>, %arg4: memref<256x1152xf32, #tpu.memory_space<vmem>>, %arg5: memref<1x1152xf32, #tpu.memory_space<vmem>>, %arg6: memref<8x128xf32, #tpu.memory_space<vmem>>, %arg7: memref<8x128xf32, #tpu.memory_space<vmem>>, %arg8: memref<8x128xf32, #tpu.memory_space<vmem>>) attributes {dimension_semantics = [#tpu.dimension_semantics<arbitrary>], iteration_bounds = array<i64: 1>, scalar_prefetch = 1 : i64, scratch_operands = 2 : i64, tpu.core_type = #tpu.core_type<tc>, window_params = [{pipeline_mode = #tpu.pipeline_mode<synchronous>, transform_indices = @transform_0, window_bounds = array<i64: 8, 128>}, {transform_indices = @transform_1, window_bounds = array<i64: 8, 8, 384>}, {pipeline_mode = #tpu.pipeline_mode<synchronous>, transform_indices = @transform_2, window_bounds = array<i64: 256, 1152>}, {pipeline_mode = #tpu.pipeline_mode<synchronous>, transform_indices = @transform_3, window_bounds = array<i64: 1, 1152>}, {pipeline_mode = #tpu.pipeline_mode<synchronous>, transform_indices = @transform_4, window_bounds = array<i64: 8, 128>}]} {
    %c0 = arith.constant 0 : index
    %0 = memref.load %arg1[%c0] : memref<1xi32, #tpu.memory_space<smem>>
    %c8_i32 = arith.constant 8 : i32
    %1 = arith.muli %arg0, %c8_i32 : i32
    %c0_i32 = arith.constant 0 : i32
    %2 = arith.cmpi eq, %arg0, %c0_i32 : i32
    %3 = arith.extui %2 : i1 to i32
    %c0_i32_0 = arith.constant 0 : i32
    %4 = arith.cmpi ne, %3, %c0_i32_0 : i32
    scf.if %4 {
      %cst = arith.constant 0.000000e+00 : f32
      %23 = vector.broadcast %cst : f32 to vector<8x128xf32>
      %c0_20 = arith.constant 0 : index
      %c0_21 = arith.constant 0 : index
      %24 = vector.load %arg7[%c0_20, %c0_21] : memref<8x128xf32, #tpu.memory_space<vmem>>, vector<8x128xf32>
      tpu.vector_store %arg7[%c0_20, %c0_21], %23 {strides = array<i32>} : memref<8x128xf32, #tpu.memory_space<vmem>>, vector<8x128xf32>,
      %cst_22 = arith.constant 0.000000e+00 : f32
      %25 = vector.broadcast %cst_22 : f32 to vector<8x128xf32>
      %c0_23 = arith.constant 0 : index
      %c0_24 = arith.constant 0 : index
      %26 = vector.load %arg8[%c0_23, %c0_24] : memref<8x128xf32, #tpu.memory_space<vmem>>, vector<8x128xf32>
      tpu.vector_store %arg8[%c0_23, %c0_24], %25 {strides = array<i32>} : memref<8x128xf32, #tpu.memory_space<vmem>>, vector<8x128xf32>,
    } else {
    }
    %c0_1 = arith.constant 0 : index
    %c0_2 = arith.constant 0 : index
    %5 = vector.load %arg4[%c0_1, %c0_2] : memref<256x1152xf32, #tpu.memory_space<vmem>>, vector<256x1152xf32>
    %c0_3 = arith.constant 0 : index
    %c0_4 = arith.constant 0 : index
    %6 = vector.load %arg5[%c0_3, %c0_4] : memref<1x1152xf32, #tpu.memory_space<vmem>>, vector<1x1152xf32>
    %7 = vector.shape_cast %6 : vector<1x1152xf32> to vector<1x1152xf32>
    %8 = vector.broadcast %7 : vector<1x1152xf32> to vector<8x1152xf32>
    %c0_5 = arith.constant 0 : index
    %c0_6 = arith.constant 0 : index
    %9 = vector.load %arg2[%c0_5, %c0_6] : memref<8x128xi32, #tpu.memory_space<vmem>>, vector<8x128xi32>
    %10 = arith.subi %0, %1 : i32
    %c0_i32_7 = arith.constant 0 : i32
    %c8_i32_8 = arith.constant 8 : i32
    %11 = arith.maxsi %c0_i32_7, %10 : i32
    %12 = arith.minsi %c8_i32_8, %11 : i32
    %c0_9 = arith.constant 0 : index
    %c0_10 = arith.constant 0 : index
    %13 = vector.load %arg7[%c0_9, %c0_10] : memref<8x128xf32, #tpu.memory_space<vmem>>, vector<8x128xf32>
    %c0_11 = arith.constant 0 : index
    %c0_12 = arith.constant 0 : index
    %14 = vector.load %arg8[%c0_11, %c0_12] : memref<8x128xf32, #tpu.memory_space<vmem>>, vector<8x128xf32>
    %c0_i32_13 = arith.constant 0 : i32
    %15 = arith.subi %12, %c0_i32_13 : i32
    %16 = arith.addi %c0_i32_13, %15 : i32
    %c1_i32 = arith.constant 1 : i32
    %17:2 = scf.for %arg9 = %c0_i32_13 to %16 step %c1_i32 iter_args(%arg10 = %13, %arg11 = %14) -> (vector<8x128xf32>, vector<8x128xf32>)  : i32 {
      %23 = arith.addi %1, %arg9 : i32
      %24 = tpu.concatenate %arg10, %arg11 in 1 : vector<8x128xf32>, vector<8x128xf32> -> vector<8x256xf32>
      %cst = arith.constant dense<0.000000e+00> : vector<8x1152xf32>
      %25 = tpu.matmul %24, %5, %cst {dimension_numbers = #tpu.dot_dimension_numbers<[1], [0], [0], [1], [0, 0, 1, 1], [], []>} : vector<8x256xf32>, vector<256x1152xf32>, vector<8x1152xf32> -> vector<8x1152xf32>
      %26 = arith.addf %25, %8 : vector<8x1152xf32>
      %27 = vector.extract_strided_slice %26 {offsets = [0, 0], sizes = [8, 384], strides = [1, 1]} : vector<8x1152xf32> to vector<8x384xf32>
      %28 = vector.extract_strided_slice %26 {offsets = [0, 384], sizes = [8, 384], strides = [1, 1]} : vector<8x1152xf32> to vector<8x384xf32>
      %29 = vector.extract_strided_slice %26 {offsets = [0, 768], sizes = [8, 384], strides = [1, 1]} : vector<8x1152xf32> to vector<8x384xf32>
      %30 = arith.index_cast %arg9 : i32 to index
      %c0_20 = arith.constant 0 : index
      %c0_21 = arith.constant 0 : index
      %31 = vector.load %arg3[%30, %c0_20, %c0_21] : memref<8x8x384xf32, #tpu.memory_space<vmem>>, vector<1x8x384xf32>
      %32 = vector.shape_cast %31 : vector<1x8x384xf32> to vector<8x384xf32>
      %33 = vector.broadcast %23 : i32 to vector<8x128xi32>
      %34 = arith.cmpi sgt, %9, %33 : vector<8x128xi32>
      %35 = vector.extract_strided_slice %32 {offsets = [0, 0], sizes = [8, 256], strides = [1, 1]} : vector<8x384xf32> to vector<8x256xf32>
      %36 = vector.extract_strided_slice %27 {offsets = [0, 0], sizes = [8, 256], strides = [1, 1]} : vector<8x384xf32> to vector<8x256xf32>
      %37 = arith.addf %35, %36 : vector<8x256xf32>
      %38 = arith.negf %37 : vector<8x256xf32>
      %39 = math.exp %38 : vector<8x256xf32>
      %cst_22 = arith.constant 1.000000e+00 : f32
      %40 = vector.broadcast %cst_22 : f32 to vector<8x256xf32>
      %41 = arith.addf %40, %39 : vector<8x256xf32>
      %42 = arith.divf %40, %41 : vector<8x256xf32>
      %43 = vector.extract_strided_slice %42 {offsets = [0, 0], sizes = [8, 128], strides = [1, 1]} : vector<8x256xf32> to vector<8x128xf32>
      %44 = vector.extract_strided_slice %42 {offsets = [0, 128], sizes = [8, 128], strides = [1, 1]} : vector<8x256xf32> to vector<8x128xf32>
      %45 = vector.extract_strided_slice %32 {offsets = [0, 256], sizes = [8, 128], strides = [1, 1]} : vector<8x384xf32> to vector<8x128xf32>
      %46 = vector.extract_strided_slice %27 {offsets = [0, 256], sizes = [8, 128], strides = [1, 1]} : vector<8x384xf32> to vector<8x128xf32>
      %47 = arith.mulf %43, %46 : vector<8x128xf32>
      %48 = arith.addf %45, %47 : vector<8x128xf32>
      %49 = math.tanh %48 : vector<8x128xf32>
      %cst_23 = arith.constant 1.000000e+00 : f32
      %50 = vector.broadcast %cst_23 : f32 to vector<8x128xf32>
      %51 = arith.subf %50, %44 : vector<8x128xf32>
      %52 = arith.mulf %51, %49 : vector<8x128xf32>
      %53 = arith.mulf %44, %arg10 : vector<8x128xf32>
      %54 = arith.addf %52, %53 : vector<8x128xf32>
      %55 = arith.select %34, %54, %arg10 : vector<8x128xi1>, vector<8x128xf32>
      %56 = vector.broadcast %23 : i32 to vector<8x128xi32>
      %57 = arith.cmpi sge, %9, %56 : vector<8x128xi32>
      %c1_i32_24 = arith.constant 1 : i32
      %58 = arith.cmpi sge, %23, %c1_i32_24 : i32
      %59 = vector.broadcast %58 : i1 to vector<8x128xi1>
      %60 = arith.andi %57, %59 : vector<8x128xi1>
      %61 = vector.extract_strided_slice %28 {offsets = [0, 0], sizes = [8, 256], strides = [1, 1]} : vector<8x384xf32> to vector<8x256xf32>
      %62 = vector.extract_strided_slice %29 {offsets = [0, 0], sizes = [8, 256], strides = [1, 1]} : vector<8x384xf32> to vector<8x256xf32>
      %63 = arith.addf %61, %62 : vector<8x256xf32>
      %64 = arith.negf %63 : vector<8x256xf32>
      %65 = math.exp %64 : vector<8x256xf32>
      %cst_25 = arith.constant 1.000000e+00 : f32
      %66 = vector.broadcast %cst_25 : f32 to vector<8x256xf32>
      %67 = arith.addf %66, %65 : vector<8x256xf32>
      %68 = arith.divf %66, %67 : vector<8x256xf32>
      %69 = vector.extract_strided_slice %68 {offsets = [0, 0], sizes = [8, 128], strides = [1, 1]} : vector<8x256xf32> to vector<8x128xf32>
      %70 = vector.extract_strided_slice %68 {offsets = [0, 128], sizes = [8, 128], strides = [1, 1]} : vector<8x256xf32> to vector<8x128xf32>
      %71 = vector.extract_strided_slice %28 {offsets = [0, 256], sizes = [8, 128], strides = [1, 1]} : vector<8x384xf32> to vector<8x128xf32>
      %72 = vector.extract_strided_slice %29 {offsets = [0, 256], sizes = [8, 128], strides = [1, 1]} : vector<8x384xf32> to vector<8x128xf32>
      %73 = arith.mulf %69, %72 : vector<8x128xf32>
      %74 = arith.addf %71, %73 : vector<8x128xf32>
      %75 = math.tanh %74 : vector<8x128xf32>
      %cst_26 = arith.constant 1.000000e+00 : f32
      %76 = vector.broadcast %cst_26 : f32 to vector<8x128xf32>
      %77 = arith.subf %76, %70 : vector<8x128xf32>
      %78 = arith.mulf %77, %75 : vector<8x128xf32>
      %79 = arith.mulf %70, %arg11 : vector<8x128xf32>
      %80 = arith.addf %78, %79 : vector<8x128xf32>
      %81 = arith.select %60, %80, %arg11 : vector<8x128xi1>, vector<8x128xf32>
      scf.yield %55, %81 : vector<8x128xf32>, vector<8x128xf32>
    }
    %c0_14 = arith.constant 0 : index
    %c0_15 = arith.constant 0 : index
    %18 = vector.load %arg7[%c0_14, %c0_15] : memref<8x128xf32, #tpu.memory_space<vmem>>, vector<8x128xf32>
    tpu.vector_store %arg7[%c0_14, %c0_15], %17#0 {strides = array<i32>} : memref<8x128xf32, #tpu.memory_space<vmem>>, vector<8x128xf32>,
    %c0_16 = arith.constant 0 : index
    %c0_17 = arith.constant 0 : index
    %19 = vector.load %arg8[%c0_16, %c0_17] : memref<8x128xf32, #tpu.memory_space<vmem>>, vector<8x128xf32>
    tpu.vector_store %arg8[%c0_16, %c0_17], %17#1 {strides = array<i32>} : memref<8x128xf32, #tpu.memory_space<vmem>>, vector<8x128xf32>,
    %c0_i32_18 = arith.constant 0 : i32
    %20 = arith.cmpi eq, %arg0, %c0_i32_18 : i32
    %21 = arith.extui %20 : i1 to i32
    %c0_i32_19 = arith.constant 0 : i32
    %22 = arith.cmpi ne, %21, %c0_i32_19 : i32
    scf.if %22 {
      %23 = tpu.concatenate %17#0, %17#1 in 1 : vector<8x128xf32>, vector<8x128xf32> -> vector<8x256xf32>
      %cst = arith.constant dense<0.000000e+00> : vector<8x1152xf32>
      %24 = tpu.matmul %23, %5, %cst {dimension_numbers = #tpu.dot_dimension_numbers<[1], [0], [0], [1], [0, 0, 1, 1], [], []>} : vector<8x256xf32>, vector<256x1152xf32>, vector<8x1152xf32> -> vector<8x1152xf32>
      %25 = arith.addf %24, %8 : vector<8x1152xf32>
      %26 = vector.extract_strided_slice %25 {offsets = [0, 384], sizes = [8, 384], strides = [1, 1]} : vector<8x1152xf32> to vector<8x384xf32>
      %27 = vector.extract_strided_slice %25 {offsets = [0, 768], sizes = [8, 384], strides = [1, 1]} : vector<8x1152xf32> to vector<8x384xf32>
      %28 = vector.broadcast %0 : i32 to vector<8x128xi32>
      %29 = arith.cmpi sge, %9, %28 : vector<8x128xi32>
      %c1_i32_20 = arith.constant 1 : i32
      %30 = arith.cmpi sge, %0, %c1_i32_20 : i32
      %31 = vector.broadcast %30 : i1 to vector<8x128xi1>
      %32 = arith.andi %29, %31 : vector<8x128xi1>
      %33 = vector.extract_strided_slice %26 {offsets = [0, 0], sizes = [8, 256], strides = [1, 1]} : vector<8x384xf32> to vector<8x256xf32>
      %34 = vector.extract_strided_slice %27 {offsets = [0, 0], sizes = [8, 256], strides = [1, 1]} : vector<8x384xf32> to vector<8x256xf32>
      %35 = arith.addf %33, %34 : vector<8x256xf32>
      %36 = arith.negf %35 : vector<8x256xf32>
      %37 = math.exp %36 : vector<8x256xf32>
      %cst_21 = arith.constant 1.000000e+00 : f32
      %38 = vector.broadcast %cst_21 : f32 to vector<8x256xf32>
      %39 = arith.addf %38, %37 : vector<8x256xf32>
      %40 = arith.divf %38, %39 : vector<8x256xf32>
      %41 = vector.extract_strided_slice %40 {offsets = [0, 0], sizes = [8, 128], strides = [1, 1]} : vector<8x256xf32> to vector<8x128xf32>
      %42 = vector.extract_strided_slice %40 {offsets = [0, 128], sizes = [8, 128], strides = [1, 1]} : vector<8x256xf32> to vector<8x128xf32>
      %43 = vector.extract_strided_slice %26 {offsets = [0, 256], sizes = [8, 128], strides = [1, 1]} : vector<8x384xf32> to vector<8x128xf32>
      %44 = vector.extract_strided_slice %27 {offsets = [0, 256], sizes = [8, 128], strides = [1, 1]} : vector<8x384xf32> to vector<8x128xf32>
      %45 = arith.mulf %41, %44 : vector<8x128xf32>
      %46 = arith.addf %43, %45 : vector<8x128xf32>
      %47 = math.tanh %46 : vector<8x128xf32>
      %cst_22 = arith.constant 1.000000e+00 : f32
      %48 = vector.broadcast %cst_22 : f32 to vector<8x128xf32>
      %49 = arith.subf %48, %42 : vector<8x128xf32>
      %50 = arith.mulf %49, %47 : vector<8x128xf32>
      %51 = arith.mulf %42, %17#1 : vector<8x128xf32>
      %52 = arith.addf %50, %51 : vector<8x128xf32>
      %53 = arith.select %32, %52, %17#1 : vector<8x128xi1>, vector<8x128xf32>
      %c0_23 = arith.constant 0 : index
      %c0_24 = arith.constant 0 : index
      %54 = vector.load %arg6[%c0_23, %c0_24] : memref<8x128xf32, #tpu.memory_space<vmem>>, vector<8x128xf32>
      tpu.vector_store %arg6[%c0_23, %c0_24], %53 {strides = array<i32>} : memref<8x128xf32, #tpu.memory_space<vmem>>, vector<8x128xf32>,
    } else {
    }
    return
  }
  func.func @transform_0(%arg0: i32, %arg1: memref<1xi32, #tpu.memory_space<smem>>) -> (i32, i32) {
    %c0_i32 = arith.constant 0 : i32
    %c0_i32_0 = arith.constant 0 : i32
    %c0_i32_1 = arith.constant 0 : i32
    return %c0_i32, %c0_i32_0 : i32, i32
  }
  func.func @transform_1(%arg0: i32, %arg1: memref<1xi32, #tpu.memory_space<smem>>) -> (i32, i32, i32) {
    %c0_i32 = arith.constant 0 : i32
    %c0_i32_0 = arith.constant 0 : i32
    %c0_i32_1 = arith.constant 0 : i32
    return %arg0, %c0_i32, %c0_i32_0 : i32, i32, i32
  }
  func.func @transform_2(%arg0: i32, %arg1: memref<1xi32, #tpu.memory_space<smem>>) -> (i32, i32) {
    %c0_i32 = arith.constant 0 : i32
    %c0_i32_0 = arith.constant 0 : i32
    %c0_i32_1 = arith.constant 0 : i32
    return %c0_i32, %c0_i32_0 : i32, i32
  }
  func.func @transform_3(%arg0: i32, %arg1: memref<1xi32, #tpu.memory_space<smem>>) -> (i32, i32) {
    %c0_i32 = arith.constant 0 : i32
    %c0_i32_0 = arith.constant 0 : i32
    %c0_i32_1 = arith.constant 0 : i32
    return %c0_i32, %c0_i32_0 : i32, i32
  }
  func.func @transform_4(%arg0: i32, %arg1: memref<1xi32, #tpu.memory_space<smem>>) -> (i32, i32) {
    %c0_i32 = arith.constant 0 : i32
    %c0_i32_0 = arith.constant 0 : i32
    %c0_i32_1 = arith.constant 0 : i32
    return %c0_i32, %c0_i32_0 : i32, i32
  }
}

</mosaic_0001>

<bundles_post_ra>
// kernel: rnn_model_forward.1
= control target key start
LH: loop header
LB: loop body
LE: loop exit
PB: predicated region body
PF: predicated region fallthrough
CT: control target
= control target key end

     0   :  { %s3958_s0 = inlined_call_operand.<no memory space> [shape: s32[1], index: 0, kind: input, shape index: {}]   ;;  %s3959_s2 = inlined_call_operand.vmem [shape: f32[8,8,384], index: 2, kind: input, shape index: {}]   ;;  %s3960_s3 = inlined_call_operand.vmem [shape: f32[256,1152], index: 3, kind: input, shape index: {}]   ;;  %s3961_s5 = inlined_call_operand.vmem [shape: f32[8,128], index: 5, kind: output, shape index: {}]   ;;  %s3962_s1 = inlined_call_operand.vmem [shape: s32[8,128], index: 1, kind: input, shape index: {}]   ;;  %s3963_s4 = inlined_call_operand.vmem [shape: f32[1,1152], index: 4, kind: input, shape index: {}]  }
   0x1   :  { %v1870_v0 = vld [vmem:[%s3960_s3] sm:$0xff]  ;;  %v1875_v1 = vld [vmem:[%s3960_s3 + $0x8] sm:$0xff]  ;;  %v1880_v2 = vld [vmem:[%s3960_s3 + $0x10] sm:$0xff]  ;;  %p366_p0 = scmp.gt.s32.totalorder %s3958_s0, 0  ;;  %p1128_p1 = scmp.lt.s32.totalorder %s3958_s0, 8 }
   0x2   :  { %3964 = vst [vmem:[#allocation6_spill] sm:$0xff] %v1870_v0  ;;  %3965 = vst [vmem:[#allocation7_spill] sm:$0xff] %v1875_v1  ;;  %v1888_v3 = vld [vmem:[%s3960_s3 + $0x18] sm:$0xff]  ;;  %v1893_v4 = vld [vmem:[%s3960_s3 + $0x20] sm:$0xff] }
   0x3   :  { %3966 = vst [vmem:[#allocation8_spill] sm:$0xff] %v1893_v4  ;;  %v1898_v5 = vld [vmem:[%s3960_s3 + $0x28] sm:$0xff]  ;;  %v1906_v6 = vld [vmem:[%s3960_s3 + $0x30] sm:$0xff]  ;;  %v1911_v7 = vld [vmem:[%s3960_s3 + $0x38] sm:$0xff]  ;;  %s367_s17 = scalar_select %p366_p0, %s3958_s0, 0 }
   0x4   :  { %3967 = vst [vmem:[#allocation9_spill] sm:$0xff] %v1898_v5  ;;  %3968 = vst [vmem:[#allocation10_spill] sm:$0xff] %v1906_v6  ;;  %v1916_v8 = vld [vmem:[%s3960_s3 + $0x40] sm:$0xff]  ;;  %v1924_v9 = vld [vmem:[%s3960_s3 + $0x48] sm:$0xff] }
   0x5   :  { %3969 = vst [vmem:[#allocation11_spill] sm:$0xff] %v1911_v7  ;;  %3970 = vst [vmem:[#allocation12_spill] sm:$0xff] %v1916_v8  ;;  %v1929_v10 = vld [vmem:[%s3960_s3 + $0x50] sm:$0xff]  ;;  %v1934_v11 = vld [vmem:[%s3960_s3 + $0x58] sm:$0xff]  ;;  %s4685_s17 = smov (!%p1128_p1, %s367_s17), 8 }
   0x6   :  { %3971 = vst [vmem:[#allocation13_spill] sm:$0xff] %v1924_v9  ;;  %3972 = vst [vmem:[#allocation14_spill] sm:$0xff] %v1929_v10  ;;  %v1939_v12 = vld [vmem:[%s3960_s3 + $0x60] sm:$0xff]  ;;  %v1944_v13 = vld [vmem:[%s3960_s3 + $0x68] sm:$0xff]  ;;  %p1133_p2 = scmp.le.s32.totalorder %s4685_s17, 0 }
   0x7   :  { %3973 = vst [vmem:[#allocation15_spill] sm:$0xff] %v1944_v13  ;;  %v1949_v14 = vld [vmem:[%s3960_s3 + $0x70] sm:$0xff]  ;;  %v1954_v15 = vld [vmem:[%s3960_s3 + $0x78] sm:$0xff]  ;;  %v1959_v16 = vld [vmem:[%s3960_s3 + $0x80] sm:$0xff] }
   0x8   :  { %3974 = vst [vmem:[#allocation16_spill] sm:$0xff] %v1949_v14  ;;  %3975 = vst [vmem:[#allocation17_spill] sm:$0xff] %v1954_v15  ;;  %v1964_v17 = vld [vmem:[%s3960_s3 + $0x88] sm:$0xff]  ;;  %v1975_v18 = vld [vmem:[%s3960_s3 + $0x90] sm:$0xff] }
   0x9   :  { %3976 = vst [vmem:[#allocation18_spill] sm:$0xff] %v1959_v16  ;;  %3977 = vst [vmem:[#allocation19_spill] sm:$0xff] %v1964_v17  ;;  %v1980_v19 = vld [vmem:[%s3960_s3 + $0x98] sm:$0xff]  ;;  %v1985_v20 = vld [vmem:[%s3960_s3 + $0xa0] sm:$0xff] }
   0xa   :  { %3978 = vst [vmem:[#allocation20_spill] sm:$0xff] %v1975_v18  ;;  %3979 = vst [vmem:[#allocation21_spill] sm:$0xff] %v1980_v19  ;;  %v1990_v21 = vld [vmem:[%s3960_s3 + $0xa8] sm:$0xff]  ;;  %v1995_v22 = vld [vmem:[%s3960_s3 + $0xb0] sm:$0xff] }
   0xb   :  { %3980 = vst [vmem:[#allocation22_spill] sm:$0xff] %v1995_v22  ;;  %v2000_v23 = vld [vmem:[%s3960_s3 + $0xb8] sm:$0xff]  ;;  %v2005_v24 = vld [vmem:[%s3960_s3 + $0xc0] sm:$0xff]  ;;  %v2010_v25 = vld [vmem:[%s3960_s3 + $0xc8] sm:$0xff] }
   0xc   :  { %3981 = vst [vmem:[#allocation23_spill] sm:$0xff] %v2000_v23  ;;  %3982 = vst [vmem:[#allocation24_spill] sm:$0xff] %v2005_v24  ;;  %v2015_v26 = vld [vmem:[%s3960_s3 + $0xd0] sm:$0xff]  ;;  %v2020_v27 = vld [vmem:[%s3960_s3 + $0xd8] sm:$0xff] }
   0xd   :  { %3983 = vst [vmem:[#allocation25_spill] sm:$0xff] %v2010_v25  ;;  %3984 = vst [vmem:[#allocation26_spill] sm:$0xff] %v2015_v26  ;;  %v2025_v28 = vld [vmem:[%s3960_s3 + $0xe0] sm:$0xff]  ;;  %v2030_v29 = vld [vmem:[%s3960_s3 + $0xe8] sm:$0xff] }
   0xe   :  { %3985 = vst [vmem:[#allocation27_spill] sm:$0xff] %v2020_v27  ;;  %3986 = vst [vmem:[#allocation28_spill] sm:$0xff] %v2025_v28  ;;  %v2035_v30 = vld [vmem:[%s3960_s3 + $0xf0] sm:$0xff]  ;;  %v2040_v31 = vld [vmem:[%s3960_s3 + $0xf8] sm:$0xff] }
   0xf   :  { %3987 = vst [vmem:[#allocation29_spill] sm:$0xff] %v2040_v31  ;;  %v2045_v32 = vld [vmem:[%s3960_s3 + $0x100] sm:$0xff]  ;;  %v2050_v33 = vld [vmem:[%s3960_s3 + $0x108] sm:$0xff]  ;;  %v2055_v34 = vld [vmem:[%s3960_s3 + $0x110] sm:$0xff] }
  0x10   :  { %3988 = vst [vmem:[#allocation30_spill] sm:$0xff] %v2045_v32  ;;  %3989 = vst [vmem:[#allocation31_spill] sm:$0xff] %v2050_v33  ;;  %v2060_v35 = vld [vmem:[%s3960_s3 + $0x118] sm:$0xff]  ;;  %v2065_v36 = vld [vmem:[%s3960_s3 + $0x120] sm:$0xff] }
  0x11   :  { %3990 = vst [vmem:[#allocation32_spill] sm:$0xff] %v2055_v34  ;;  %3991 = vst [vmem:[#allocation33_spill] sm:$0xff] %v2060_v35  ;;  %v2070_v37 = vld [vmem:[%s3960_s3 + $0x128] sm:$0xff]  ;;  %v2075_v38 = vld [vmem:[%s3960_s3 + $0x130] sm:$0xff] }
  0x12   :  { %3992 = vst [vmem:[#allocation34_spill] sm:$0xff] %v2065_v36  ;;  %3993 = vst [vmem:[#allocation35_spill] sm:$0xff] %v2070_v37  ;;  %v2080_v39 = vld [vmem:[%s3960_s3 + $0x138] sm:$0xff]  ;;  %v2085_v40 = vld [vmem:[%s3960_s3 + $0x140] sm:$0xff] }
  0x13   :  { %3994 = vst [vmem:[#allocation36_spill] sm:$0xff] %v2085_v40  ;;  %v2090_v41 = vld [vmem:[%s3960_s3 + $0x148] sm:$0xff]  ;;  %v2095_v42 = vld [vmem:[%s3960_s3 + $0x150] sm:$0xff]  ;;  %v2100_v43 = vld [vmem:[%s3960_s3 + $0x158] sm:$0xff] }
  0x14   :  { %3995 = vst [vmem:[#allocation37_spill] sm:$0xff] %v2090_v41  ;;  %3996 = vst [vmem:[#allocation38_spill] sm:$0xff] %v2095_v42  ;;  %v2105_v44 = vld [vmem:[%s3960_s3 + $0x160] sm:$0xff]  ;;  %v2110_v45 = vld [vmem:[%s3960_s3 + $0x168] sm:$0xff] }
  0x15   :  { %3997 = vst [vmem:[#allocation39_spill] sm:$0xff] %v2100_v43  ;;  %3998 = vst [vmem:[#allocation40_spill] sm:$0xff] %v2105_v44  ;;  %v2115_v46 = vld [vmem:[%s3960_s3 + $0x170] sm:$0xff]  ;;  %v2120_v47 = vld [vmem:[%s3960_s3 + $0x178] sm:$0xff] }
  0x16   :  { %v2125_v48 = vld [vmem:[%s3960_s3 + $0x180] sm:$0xff]  ;;  %v2130_v49 = vld [vmem:[%s3960_s3 + $0x188] sm:$0xff]  ;;  %v2135_v50 = vld [vmem:[%s3960_s3 + $0x190] sm:$0xff] }
  0x17   :  { %3999 = vst [vmem:[#allocation41_spill] sm:$0xff] %v2130_v49  ;;  %4000 = vst [vmem:[#allocation42_spill] sm:$0xff] %v2135_v50  ;;  %v2140_v51 = vld [vmem:[%s3960_s3 + $0x198] sm:$0xff]  ;;  %v2145_v52 = vld [vmem:[%s3960_s3 + $0x1a0] sm:$0xff] }
  0x18   :  { %4001 = vst [vmem:[#allocation43_spill] sm:$0xff] %v2140_v51  ;;  %4002 = vst [vmem:[#allocation44_spill] sm:$0xff] %v2145_v52  ;;  %v2150_v53 = vld [vmem:[%s3960_s3 + $0x1a8] sm:$0xff]  ;;  %v2155_v54 = vld [vmem:[%s3960_s3 + $0x1b0] sm:$0xff] }
  0x19   :  { %4003 = vst [vmem:[#allocation45_spill] sm:$0xff] %v2150_v53  ;;  %v2160_v55 = vld [vmem:[%s3960_s3 + $0x1b8] sm:$0xff]  ;;  %v2165_v56 = vld [vmem:[%s3960_s3 + $0x1c0] sm:$0xff]  ;;  %v2170_v57 = vld [vmem:[%s3960_s3 + $0x1c8] sm:$0xff] }
  0x1a   :  { %v2175_v58 = vld [vmem:[%s3960_s3 + $0x1d0] sm:$0xff]  ;;  %v2180_v59 = vld [vmem:[%s3960_s3 + $0x1d8] sm:$0xff]  ;;  %v2185_v60 = vld [vmem:[%s3960_s3 + $0x1e0] sm:$0xff] }
  0x1b   :  { %4004 = vst [vmem:[#allocation46_spill] sm:$0xff] %v2175_v58  ;;  %4005 = vst [vmem:[#allocation47_spill] sm:$0xff] %v2180_v59  ;;  %v2190_v61 = vld [vmem:[%s3960_s3 + $0x1e8] sm:$0xff]  ;;  %v2195_v62 = vld [vmem:[%s3960_s3 + $0x1f0] sm:$0xff] }
  0x1c   :  { %4006 = vst [vmem:[#allocation48_spill] sm:$0xff] %v2185_v60  ;;  %4007 = vst [vmem:[#allocation49_spill] sm:$0xff] %v2190_v61  ;;  %v2200_v63 = vld [vmem:[%s3960_s3 + $0x1f8] sm:$0xff]  ;;  %v2205_v53 = vld [vmem:[%s3960_s3 + $0x200] sm:$0xff] }
  0x1d   :  { %4008 = vst [vmem:[#allocation50_spill] sm:$0xff] %v2195_v62  ;;  %v2210_v44 = vld [vmem:[%s3960_s3 + $0x208] sm:$0xff]  ;;  %v2215_v35 = vld [vmem:[%s3960_s3 + $0x210] sm:$0xff]  ;;  %v2220_v62 = vld [vmem:[%s3960_s3 + $0x218] sm:$0xff] }
  0x1e   :  { %4009 = vst [vmem:[#allocation51_spill] sm:$0xff] %v2220_v62  ;;  %v2225_v26 = vld [vmem:[%s3960_s3 + $0x220] sm:$0xff]  ;;  %v2230_v17 = vld [vmem:[%s3960_s3 + $0x228] sm:$0xff]  ;;  %v2235_v8 = vld [vmem:[%s3960_s3 + $0x230] sm:$0xff] }
  0x1f   :  { %4010 = vst [vmem:[#allocation52_spill] sm:$0xff] %v2225_v26  ;;  %4011 = vst [vmem:[#allocation53_spill] sm:$0xff] %v2230_v17  ;;  %v2240_v60 = vld [vmem:[%s3960_s3 + $0x238] sm:$0xff]  ;;  %v2245_v62 = vld [vmem:[%s3960_s3 + $0x240] sm:$0xff] }
  0x20   :  { %4012 = vst [vmem:[#allocation54_spill] sm:$0xff] %v2235_v8  ;;  %4013 = vst [vmem:[#allocation55_spill] sm:$0xff] %v2240_v60  ;;  %v2250_v58 = vld [vmem:[%s3960_s3 + $0x248] sm:$0xff]  ;;  %v2255_v17 = vld [vmem:[%s3960_s3 + $0x250] sm:$0xff] }
  0x21   :  { %v2260_v8 = vld [vmem:[%s3960_s3 + $0x258] sm:$0xff]  ;;  %v2265_v60 = vld [vmem:[%s3960_s3 + $0x260] sm:$0xff]  ;;  %v2270_v61 = vld [vmem:[%s3960_s3 + $0x268] sm:$0xff] }
  0x22   :  { %4014 = vst [vmem:[#allocation56_spill] sm:$0xff] %v2265_v60  ;;  %4015 = vst [vmem:[#allocation57_spill] sm:$0xff] %v2270_v61  ;;  %v2275_v26 = vld [vmem:[%s3960_s3 + $0x270] sm:$0xff]  ;;  %v2280_v59 = vld [vmem:[%s3960_s3 + $0x278] sm:$0xff] }
  0x23   :  { %4016 = vst [vmem:[#allocation58_spill] sm:$0xff] %v2275_v26  ;;  %4017 = vst [vmem:[#allocation59_spill] sm:$0xff] %v2280_v59  ;;  %v2285_v51 = vld [vmem:[%s3960_s3 + $0x280] sm:$0xff]  ;;  %v2290_v60 = vld [vmem:[%s3960_s3 + $0x288] sm:$0xff] }
  0x24   :  { %4018 = vst [vmem:[#allocation60_spill] sm:$0xff] %v2285_v51  ;;  %v2295_v61 = vld [vmem:[%s3960_s3 + $0x290] sm:$0xff]  ;;  %v2300_v26 = vld [vmem:[%s3960_s3 + $0x298] sm:$0xff]  ;;  %v2305_v59 = vld [vmem:[%s3960_s3 + $0x2a0] sm:$0xff] }
  0x25   :  { %v2310_v51 = vld [vmem:[%s3960_s3 + $0x2a8] sm:$0xff]  ;;  %v2315_v42 = vld [vmem:[%s3960_s3 + $0x2b0] sm:$0xff]  ;;  %v2320_v49 = vld [vmem:[%s3960_s3 + $0x2b8] sm:$0xff] }
  0x26   :  { %4019 = vst [vmem:[#allocation61_spill] sm:$0xff] %v2310_v51  ;;  %4020 = vst [vmem:[#allocation62_spill] sm:$0xff] %v2315_v42  ;;  %v2325_v40 = vld [vmem:[%s3960_s3 + $0x2c0] sm:$0xff]  ;;  %v2330_v52 = vld [vmem:[%s3960_s3 + $0x2c8] sm:$0xff] }
  0x27   :  { %4021 = vst [vmem:[#allocation63_spill] sm:$0xff] %v2320_v49  ;;  %4022 = vst [vmem:[#allocation64_spill] sm:$0xff] %v2325_v40  ;;  %v2335_v51 = vld [vmem:[%s3960_s3 + $0x2d0] sm:$0xff]  ;;  %v2340_v42 = vld [vmem:[%s3960_s3 + $0x2d8] sm:$0xff] }
  0x28   :  { %4023 = vst [vmem:[#allocation65_spill] sm:$0xff] %v2330_v52  ;;  %4024 = vst [vmem:[#allocation66_spill] sm:$0xff] %v2340_v42  ;;  %v2345_v49 = vld [vmem:[%s3960_s3 + $0x2e0] sm:$0xff]  ;;  %v2350_v40 = vld [vmem:[%s3960_s3 + $0x2e8] sm:$0xff] }
  0x29   :  { %4025 = vst [vmem:[#allocation67_spill] sm:$0xff] %v2345_v49  ;;  %v2355_v52 = vld [vmem:[%s3960_s3 + $0x2f0] sm:$0xff]  ;;  %v2360_v43 = vld [vmem:[%s3960_s3 + $0x2f8] sm:$0xff]  ;;  %v2365_v50 = vld [vmem:[%s3960_s3 + $0x300] sm:$0xff] }
  0x2a   :  { %4026 = vst [vmem:[#allocation68_spill] sm:$0xff] %v2355_v52  ;;  %4027 = vst [vmem:[#allocation69_spill] sm:$0xff] %v2360_v43  ;;  %v2370_v41 = vld [vmem:[%s3960_s3 + $0x308] sm:$0xff]  ;;  %v2375_v33 = vld [vmem:[%s3960_s3 + $0x310] sm:$0xff] }
  0x2b   :  { %4028 = vst [vmem:[#allocation70_spill] sm:$0xff] %v2365_v50  ;;  %4029 = vst [vmem:[#allocation71_spill] sm:$0xff] %v2370_v41  ;;  %v2380_v52 = vld [vmem:[%s3960_s3 + $0x318] sm:$0xff]  ;;  %v2385_v43 = vld [vmem:[%s3960_s3 + $0x320] sm:$0xff] }
  0x2c   :  { %4030 = vst [vmem:[#allocation72_spill] sm:$0xff] %v2375_v33  ;;  %4031 = vst [vmem:[#allocation73_spill] sm:$0xff] %v2380_v52  ;;  %v2390_v50 = vld [vmem:[%s3960_s3 + $0x328] sm:$0xff]  ;;  %v2395_v41 = vld [vmem:[%s3960_s3 + $0x330] sm:$0xff]  ;;  %v3352_v52 = vmov 0.0  }
  0x2d   :  { %4032 = vst [vmem:[#allocation74_spill] sm:$0xff] %v2385_v43  ;;  %4033 = vst [vmem:[#allocation75_spill] sm:$0xff] %v2390_v50  ;;  %v2400_v33 = vld [vmem:[%s3960_s3 + $0x338] sm:$0xff]  ;;  %v2405_v24 = vld [vmem:[%s3960_s3 + $0x340] sm:$0xff] }
  0x2e   :  { %4034 = vst [vmem:[#allocation76_spill] sm:$0xff] %v2400_v33  ;;  %4035 = vst [vmem:[#allocation77_spill] sm:$0xff] %v2405_v24  ;;  %v2410_v31 = vld [vmem:[%s3960_s3 + $0x348] sm:$0xff]  ;;  %v2415_v22 = vld [vmem:[%s3960_s3 + $0x350] sm:$0xff] }
  0x2f   :  { %4036 = vst [vmem:[#allocation78_spill] sm:$0xff] %v2410_v31  ;;  %4037 = vst [vmem:[#allocation79_spill] sm:$0xff] %v2415_v22  ;;  %v2420_v34 = vld [vmem:[%s3960_s3 + $0x358] sm:$0xff]  ;;  %v2425_v33 = vld [vmem:[%s3960_s3 + $0x360] sm:$0xff] }
  0x30   :  { %4038 = vst [vmem:[#allocation80_spill] sm:$0xff] %v2420_v34  ;;  %4039 = vst [vmem:[#allocation81_spill] sm:$0xff] %v2425_v33  ;;  %v2430_v24 = vld [vmem:[%s3960_s3 + $0x368] sm:$0xff]  ;;  %v2435_v31 = vld [vmem:[%s3960_s3 + $0x370] sm:$0xff] }
  0x31   :  { %4040 = vst [vmem:[#allocation82_spill] sm:$0xff] %v2430_v24  ;;  %4041 = vst [vmem:[#allocation83_spill] sm:$0xff] %v2435_v31  ;;  %v2440_v22 = vld [vmem:[%s3960_s3 + $0x378] sm:$0xff]  ;;  %v2445_v34 = vld [vmem:[%s3960_s3 + $0x380] sm:$0xff] }
  0x32   :  { %4042 = vst [vmem:[#allocation84_spill] sm:$0xff] %v2440_v22  ;;  %4043 = vst [vmem:[#allocation85_spill] sm:$0xff] %v2445_v34  ;;  %v2450_v25 = vld [vmem:[%s3960_s3 + $0x388] sm:$0xff]  ;;  %v2455_v32 = vld [vmem:[%s3960_s3 + $0x390] sm:$0xff] }
  0x33   :  { %4044 = vst [vmem:[#allocation86_spill] sm:$0xff] %v2450_v25  ;;  %4045 = vst [vmem:[#allocation87_spill] sm:$0xff] %v2455_v32  ;;  %v2460_v23 = vld [vmem:[%s3960_s3 + $0x398] sm:$0xff]  ;;  %v2465_v15 = vld [vmem:[%s3960_s3 + $0x3a0] sm:$0xff] }
  0x34   :  { %4046 = vst [vmem:[#allocation88_spill] sm:$0xff] %v2460_v23  ;;  %4047 = vst [vmem:[#allocation89_spill] sm:$0xff] %v2465_v15  ;;  %v2470_v34 = vld [vmem:[%s3960_s3 + $0x3a8] sm:$0xff]  ;;  %v2475_v25 = vld [vmem:[%s3960_s3 + $0x3b0] sm:$0xff] }
  0x35   :  { %4048 = vst [vmem:[#allocation90_spill] sm:$0xff] %v2470_v34  ;;  %4049 = vst [vmem:[#allocation91_spill] sm:$0xff] %v2475_v25  ;;  %v2480_v32 = vld [vmem:[%s3960_s3 + $0x3b8] sm:$0xff]  ;;  %v2485_v23 = vld [vmem:[%s3960_s3 + $0x3c0] sm:$0xff] }
  0x36   :  { %4050 = vst [vmem:[#allocation92_spill] sm:$0xff] %v2480_v32  ;;  %4051 = vst [vmem:[#allocation93_spill] sm:$0xff] %v2485_v23  ;;  %v2490_v15 = vld [vmem:[%s3960_s3 + $0x3c8] sm:$0xff]  ;;  %v2495_v6 = vld [vmem:[%s3960_s3 + $0x3d0] sm:$0xff] }
  0x37   :  { %4052 = vst [vmem:[#allocation94_spill] sm:$0xff] %v2490_v15  ;;  %4053 = vst [vmem:[#allocation95_spill] sm:$0xff] %v2495_v6  ;;  %v2500_v13 = vld [vmem:[%s3960_s3 + $0x3d8] sm:$0xff]  ;;  %v2505_v4 = vld [vmem:[%s3960_s3 + $0x3e0] sm:$0xff] }
  0x38   :  { %4054 = vst [vmem:[#allocation96_spill] sm:$0xff] %v2500_v13  ;;  %4055 = vst [vmem:[#allocation97_spill] sm:$0xff] %v2505_v4  ;;  %v2510_v16 = vld [vmem:[%s3960_s3 + $0x3e8] sm:$0xff]  ;;  %v2515_v15 = vld [vmem:[%s3960_s3 + $0x3f0] sm:$0xff] }
  0x39   :  { %4056 = vst [vmem:[#allocation98_spill] sm:$0xff] %v2510_v16  ;;  %4057 = vst [vmem:[#allocation99_spill] sm:$0xff] %v2515_v15  ;;  %v2520_v6 = vld [vmem:[%s3960_s3 + $0x3f8] sm:$0xff]  ;;  %v2525_v13 = vld [vmem:[%s3960_s3 + $0x400] sm:$0xff] }
  0x3a   :  { %4058 = vst [vmem:[#allocation100_spill] sm:$0xff] %v2520_v6  ;;  %4059 = vst [vmem:[#allocation101_spill] sm:$0xff] %v2525_v13  ;;  %v2530_v4 = vld [vmem:[%s3960_s3 + $0x408] sm:$0xff]  ;;  %v2535_v16 = vld [vmem:[%s3960_s3 + $0x410] sm:$0xff] }
  0x3b   :  { %4060 = vst [vmem:[#allocation102_spill] sm:$0xff] %v2530_v4  ;;  %4061 = vst [vmem:[#allocation103_spill] sm:$0xff] %v2535_v16  ;;  %v2540_v7 = vld [vmem:[%s3960_s3 + $0x418] sm:$0xff]  ;;  %v2545_v14 = vld [vmem:[%s3960_s3 + $0x420] sm:$0xff] }
  0x3c   :  { %4062 = vst [vmem:[#allocation104_spill] sm:$0xff] %v2540_v7  ;;  %4063 = vst [vmem:[#allocation105_spill] sm:$0xff] %v2545_v14  ;;  %v2550_v5 = vld [vmem:[%s3960_s3 + $0x428] sm:$0xff]  ;;  %v2555_v13 = vld [vmem:[%s3960_s3 + $0x430] sm:$0xff] }
  0x3d   :  { %4064 = vst [vmem:[#allocation106_spill] sm:$0xff] %v2550_v5  ;;  %4065 = vst [vmem:[#allocation107_spill] sm:$0xff] %v2555_v13  ;;  %v2560_v16 = vld [vmem:[%s3960_s3 + $0x438] sm:$0xff]  ;;  %v2565_v7 = vld [vmem:[%s3960_s3 + $0x440] sm:$0xff] }
  0x3e   :  { %4066 = vst [vmem:[#allocation108_spill] sm:$0xff] %v2560_v16  ;;  %4067 = vst [vmem:[#allocation109_spill] sm:$0xff] %v2565_v7  ;;  %v2570_v14 = vld [vmem:[%s3960_s3 + $0x448] sm:$0xff]  ;;  %v2575_v5 = vld [vmem:[%s3960_s3 + $0x450] sm:$0xff] }
  0x3f   :  { %4068 = vst [vmem:[#allocation110_spill] sm:$0xff] %v2570_v14  ;;  %4069 = vst [vmem:[#allocation111_spill] sm:$0xff] %v2575_v5  ;;  %v2580_v13 = vld [vmem:[%s3960_s3 + $0x458] sm:$0xff]  ;;  %v2585_v16 = vld [vmem:[%s3960_s3 + $0x460] sm:$0xff] }
  0x40   :  { %4070 = vst [vmem:[#allocation112_spill] sm:$0xff] %v2580_v13  ;;  %4071 = vst [vmem:[#allocation113_spill] sm:$0xff] %v2585_v16  ;;  %v2590_v15 = vld [vmem:[%s3960_s3 + $0x468] sm:$0xff]  ;;  %v2595_v14 = vld [vmem:[%s3960_s3 + $0x470] sm:$0xff] }
  0x41   :  { %4072 = vst [vmem:[#allocation114_spill] sm:$0xff] %v2590_v15  ;;  %4073 = vst [vmem:[#allocation115_spill] sm:$0xff] %v2595_v14  ;;  %v2600_v5 = vld [vmem:[%s3960_s3 + $0x478] sm:$0xff]  ;;  %v2605_v13 = vld [vmem:[%s3960_s3 + $0x480] sm:$0xff] }
  0x42   :  { %4074 = vst [vmem:[#allocation116_spill] sm:$0xff] %v2600_v5  ;;  %4075 = vst [vmem:[#allocation117_spill] sm:$0xff] %v2605_v13  ;;  %v2610_v16 = vld [vmem:[%s3960_s3 + $0x488] sm:$0xff]  ;;  %v2615_v15 = vld [vmem:[%s3960_s3 + $0x490] sm:$0xff] }
  0x43   :  { %4076 = vst [vmem:[#allocation118_spill] sm:$0xff] %v2610_v16  ;;  %4077 = vst [vmem:[#allocation119_spill] sm:$0xff] %v2615_v15  ;;  %v2620_v14 = vld [vmem:[%s3960_s3 + $0x498] sm:$0xff]  ;;  %v2625_v5 = vld [vmem:[%s3960_s3 + $0x4a0] sm:$0xff] }
  0x44   :  { %4078 = vst [vmem:[#allocation120_spill] sm:$0xff] %v2620_v14  ;;  %4079 = vst [vmem:[#allocation121_spill] sm:$0xff] %v2625_v5  ;;  %v2630_v13 = vld [vmem:[%s3960_s3 + $0x4a8] sm:$0xff]  ;;  %v2635_v16 = vld [vmem:[%s3960_s3 + $0x4b0] sm:$0xff] }
  0x45   :  { %4080 = vst [vmem:[#allocation122_spill] sm:$0xff] %v2630_v13  ;;  %4081 = vst [vmem:[#allocation123_spill] sm:$0xff] %v2635_v16  ;;  %v2640_v15 = vld [vmem:[%s3960_s3 + $0x4b8] sm:$0xff]  ;;  %v2645_v14 = vld [vmem:[%s3960_s3 + $0x4c0] sm:$0xff] }
  0x46   :  { %4082 = vst [vmem:[#allocation124_spill] sm:$0xff] %v2640_v15  ;;  %4083 = vst [vmem:[#allocation125_spill] sm:$0xff] %v2645_v14  ;;  %v2650_v5 = vld [vmem:[%s3960_s3 + $0x4c8] sm:$0xff]  ;;  %v2655_v13 = vld [vmem:[%s3960_s3 + $0x4d0] sm:$0xff] }
  0x47   :  { %4084 = vst [vmem:[#allocation126_spill] sm:$0xff] %v2650_v5  ;;  %4085 = vst [vmem:[#allocation127_spill] sm:$0xff] %v2655_v13  ;;  %v2660_v16 = vld [vmem:[%s3960_s3 + $0x4d8] sm:$0xff]  ;;  %v2665_v15 = vld [vmem:[%s3960_s3 + $0x4e0] sm:$0xff] }
  0x48   :  { %4086 = vst [vmem:[#allocation128_spill] sm:$0xff] %v2660_v16  ;;  %4087 = vst [vmem:[#allocation129_spill] sm:$0xff] %v2665_v15  ;;  %v2670_v14 = vld [vmem:[%s3960_s3 + $0x4e8] sm:$0xff]  ;;  %v2675_v5 = vld [vmem:[%s3960_s3 + $0x4f0] sm:$0xff] }
  0x49   :  { %4088 = vst [vmem:[#allocation130_spill] sm:$0xff] %v2670_v14  ;;  %4089 = vst [vmem:[#allocation131_spill] sm:$0xff] %v2675_v5  ;;  %v2680_v13 = vld [vmem:[%s3960_s3 + $0x4f8] sm:$0xff]  ;;  %v2685_v16 = vld [vmem:[%s3960_s3 + $0x500] sm:$0xff] }
  0x4a   :  { %4090 = vst [vmem:[#allocation132_spill] sm:$0xff] %v2680_v13  ;;  %4091 = vst [vmem:[#allocation133_spill] sm:$0xff] %v2685_v16  ;;  %v2690_v15 = vld [vmem:[%s3960_s3 + $0x508] sm:$0xff]  ;;  %v2695_v14 = vld [vmem:[%s3960_s3 + $0x510] sm:$0xff] }
  0x4b   :  { %4092 = vst [vmem:[#allocation134_spill] sm:$0xff] %v2690_v15  ;;  %4093 = vst [vmem:[#allocation135_spill] sm:$0xff] %v2695_v14  ;;  %v2700_v5 = vld [vmem:[%s3960_s3 + $0x518] sm:$0xff]  ;;  %v2705_v13 = vld [vmem:[%s3960_s3 + $0x520] sm:$0xff] }
  0x4c   :  { %4094 = vst [vmem:[#allocation136_spill] sm:$0xff] %v2700_v5  ;;  %4095 = vst [vmem:[#allocation137_spill] sm:$0xff] %v2705_v13  ;;  %v2710_v16 = vld [vmem:[%s3960_s3 + $0x528] sm:$0xff]  ;;  %v2715_v15 = vld [vmem:[%s3960_s3 + $0x530] sm:$0xff] }
  0x4d   :  { %4096 = vst [vmem:[#allocation138_spill] sm:$0xff] %v2710_v16  ;;  %4097 = vst [vmem:[#allocation139_spill] sm:$0xff] %v2715_v15  ;;  %v2720_v14 = vld [vmem:[%s3960_s3 + $0x538] sm:$0xff]  ;;  %v2725_v5 = vld [vmem:[%s3960_s3 + $0x540] sm:$0xff] }
  0x4e   :  { %4098 = vst [vmem:[#allocation140_spill] sm:$0xff] %v2720_v14  ;;  %4099 = vst [vmem:[#allocation141_spill] sm:$0xff] %v2725_v5  ;;  %v2730_v13 = vld [vmem:[%s3960_s3 + $0x548] sm:$0xff]  ;;  %v2735_v16 = vld [vmem:[%s3960_s3 + $0x550] sm:$0xff] }
  0x4f   :  { %4100 = vst [vmem:[#allocation142_spill] sm:$0xff] %v2730_v13  ;;  %4101 = vst [vmem:[#allocation143_spill] sm:$0xff] %v2735_v16  ;;  %v2740_v15 = vld [vmem:[%s3960_s3 + $0x558] sm:$0xff]  ;;  %v2745_v14 = vld [vmem:[%s3960_s3 + $0x560] sm:$0xff] }
  0x50   :  { %4102 = vst [vmem:[#allocation144_spill] sm:$0xff] %v2740_v15  ;;  %4103 = vst [vmem:[#allocation145_spill] sm:$0xff] %v2745_v14  ;;  %v2750_v5 = vld [vmem:[%s3960_s3 + $0x568] sm:$0xff]  ;;  %v2755_v13 = vld [vmem:[%s3960_s3 + $0x570] sm:$0xff] }
  0x51   :  { %4104 = vst [vmem:[#allocation146_spill] sm:$0xff] %v2750_v5  ;;  %4105 = vst [vmem:[#allocation147_spill] sm:$0xff] %v2755_v13  ;;  %v2760_v16 = vld [vmem:[%s3960_s3 + $0x578] sm:$0xff]  ;;  %v2765_v15 = vld [vmem:[%s3960_s3 + $0x580] sm:$0xff] }
  0x52   :  { %4106 = vst [vmem:[#allocation148_spill] sm:$0xff] %v2760_v16  ;;  %4107 = vst [vmem:[#allocation149_spill] sm:$0xff] %v2765_v15  ;;  %v2770_v14 = vld [vmem:[%s3960_s3 + $0x588] sm:$0xff]  ;;  %v2775_v5 = vld [vmem:[%s3960_s3 + $0x590] sm:$0xff] }
  0x53   :  { %4108 = vst [vmem:[#allocation150_spill] sm:$0xff] %v2770_v14  ;;  %4109 = vst [vmem:[#allocation151_spill] sm:$0xff] %v2775_v5  ;;  %v2780_v13 = vld [vmem:[%s3960_s3 + $0x598] sm:$0xff]  ;;  %v2785_v16 = vld [vmem:[%s3960_s3 + $0x5a0] sm:$0xff] }
  0x54   :  { %4110 = vst [vmem:[#allocation152_spill] sm:$0xff] %v2780_v13  ;;  %4111 = vst [vmem:[#allocation153_spill] sm:$0xff] %v2785_v16  ;;  %v2790_v15 = vld [vmem:[%s3960_s3 + $0x5a8] sm:$0xff]  ;;  %v2795_v14 = vld [vmem:[%s3960_s3 + $0x5b0] sm:$0xff] }
  0x55   :  { %4112 = vst [vmem:[#allocation154_spill] sm:$0xff] %v2790_v15  ;;  %4113 = vst [vmem:[#allocation155_spill] sm:$0xff] %v2795_v14  ;;  %v2800_v5 = vld [vmem:[%s3960_s3 + $0x5b8] sm:$0xff]  ;;  %v2805_v13 = vld [vmem:[%s3960_s3 + $0x5c0] sm:$0xff] }
  0x56   :  { %4114 = vst [vmem:[#allocation156_spill] sm:$0xff] %v2800_v5  ;;  %4115 = vst [vmem:[#allocation157_spill] sm:$0xff] %v2805_v13  ;;  %v2810_v16 = vld [vmem:[%s3960_s3 + $0x5c8] sm:$0xff]  ;;  %v2815_v15 = vld [vmem:[%s3960_s3 + $0x5d0] sm:$0xff] }
  0x57   :  { %4116 = vst [vmem:[#allocation158_spill] sm:$0xff] %v2810_v16  ;;  %4117 = vst [vmem:[#allocation159_spill] sm:$0xff] %v2815_v15  ;;  %v2820_v14 = vld [vmem:[%s3960_s3 + $0x5d8] sm:$0xff]  ;;  %v2825_v5 = vld [vmem:[%s3960_s3 + $0x5e0] sm:$0xff] }
  0x58   :  { %4118 = vst [vmem:[#allocation160_spill] sm:$0xff] %v2820_v14  ;;  %4119 = vst [vmem:[#allocation161_spill] sm:$0xff] %v2825_v5  ;;  %v2830_v13 = vld [vmem:[%s3960_s3 + $0x5e8] sm:$0xff]  ;;  %v2835_v16 = vld [vmem:[%s3960_s3 + $0x5f0] sm:$0xff] }
  0x59   :  { %4120 = vst [vmem:[#allocation162_spill] sm:$0xff] %v2830_v13  ;;  %4121 = vst [vmem:[#allocation163_spill] sm:$0xff] %v2835_v16  ;;  %v2840_v15 = vld [vmem:[%s3960_s3 + $0x5f8] sm:$0xff]  ;;  %v2845_v14 = vld [vmem:[%s3960_s3 + $0x600] sm:$0xff] }
  0x5a   :  { %4122 = vst [vmem:[#allocation164_spill] sm:$0xff] %v2840_v15  ;;  %4123 = vst [vmem:[#allocation165_spill] sm:$0xff] %v2845_v14  ;;  %v2850_v5 = vld [vmem:[%s3960_s3 + $0x608] sm:$0xff]  ;;  %v2855_v13 = vld [vmem:[%s3960_s3 + $0x610] sm:$0xff] }
  0x5b   :  { %4124 = vst [vmem:[#allocation166_spill] sm:$0xff] %v2850_v5  ;;  %4125 = vst [vmem:[#allocation167_spill] sm:$0xff] %v2855_v13  ;;  %v2860_v16 = vld [vmem:[%s3960_s3 + $0x618] sm:$0xff]  ;;  %v2865_v15 = vld [vmem:[%s3960_s3 + $0x620] sm:$0xff] }
  0x5c   :  { %4126 = vst [vmem:[#allocation168_spill] sm:$0xff] %v2860_v16  ;;  %4127 = vst [vmem:[#allocation169_spill] sm:$0xff] %v2865_v15  ;;  %v2870_v14 = vld [vmem:[%s3960_s3 + $0x628] sm:$0xff]  ;;  %v2875_v5 = vld [vmem:[%s3960_s3 + $0x630] sm:$0xff] }
  0x5d   :  { %4128 = vst [vmem:[#allocation170_spill] sm:$0xff] %v2870_v14  ;;  %4129 = vst [vmem:[#allocation171_spill] sm:$0xff] %v2875_v5  ;;  %v2880_v13 = vld [vmem:[%s3960_s3 + $0x638] sm:$0xff]  ;;  %v2885_v16 = vld [vmem:[%s3960_s3 + $0x640] sm:$0xff] }
  0x5e   :  { %4130 = vst [vmem:[#allocation172_spill] sm:$0xff] %v2880_v13  ;;  %4131 = vst [vmem:[#allocation173_spill] sm:$0xff] %v2885_v16  ;;  %v2890_v15 = vld [vmem:[%s3960_s3 + $0x648] sm:$0xff]  ;;  %v2895_v14 = vld [vmem:[%s3960_s3 + $0x650] sm:$0xff] }
  0x5f   :  { %4132 = vst [vmem:[#allocation174_spill] sm:$0xff] %v2890_v15  ;;  %4133 = vst [vmem:[#allocation175_spill] sm:$0xff] %v2895_v14  ;;  %v2900_v5 = vld [vmem:[%s3960_s3 + $0x658] sm:$0xff]  ;;  %v2905_v13 = vld [vmem:[%s3960_s3 + $0x660] sm:$0xff] }
  0x60   :  { %4134 = vst [vmem:[#allocation176_spill] sm:$0xff] %v2900_v5  ;;  %4135 = vst [vmem:[#allocation177_spill] sm:$0xff] %v2905_v13  ;;  %v2910_v16 = vld [vmem:[%s3960_s3 + $0x668] sm:$0xff]  ;;  %v2915_v15 = vld [vmem:[%s3960_s3 + $0x670] sm:$0xff] }
  0x61   :  { %4136 = vst [vmem:[#allocation178_spill] sm:$0xff] %v2910_v16  ;;  %4137 = vst [vmem:[#allocation179_spill] sm:$0xff] %v2915_v15  ;;  %v2920_v14 = vld [vmem:[%s3960_s3 + $0x678] sm:$0xff]  ;;  %v2925_v5 = vld [vmem:[%s3960_s3 + $0x680] sm:$0xff] }
  0x62   :  { %4138 = vst [vmem:[#allocation180_spill] sm:$0xff] %v2920_v14  ;;  %4139 = vst [vmem:[#allocation181_spill] sm:$0xff] %v2925_v5  ;;  %v2930_v13 = vld [vmem:[%s3960_s3 + $0x688] sm:$0xff]  ;;  %v2935_v16 = vld [vmem:[%s3960_s3 + $0x690] sm:$0xff] }
  0x63   :  { %4140 = vst [vmem:[#allocation182_spill] sm:$0xff] %v2930_v13  ;;  %4141 = vst [vmem:[#allocation183_spill] sm:$0xff] %v2935_v16  ;;  %v2940_v15 = vld [vmem:[%s3960_s3 + $0x698] sm:$0xff]  ;;  %v2945_v14 = vld [vmem:[%s3960_s3 + $0x6a0] sm:$0xff] }
  0x64   :  { %4142 = vst [vmem:[#allocation184_spill] sm:$0xff] %v2940_v15  ;;  %4143 = vst [vmem:[#allocation185_spill] sm:$0xff] %v2945_v14  ;;  %v2950_v5 = vld [vmem:[%s3960_s3 + $0x6a8] sm:$0xff]  ;;  %v2955_v13 = vld [vmem:[%s3960_s3 + $0x6b0] sm:$0xff] }
  0x65   :  { %4144 = vst [vmem:[#allocation186_spill] sm:$0xff] %v2950_v5  ;;  %4145 = vst [vmem:[#allocation187_spill] sm:$0xff] %v2955_v13  ;;  %v2960_v16 = vld [vmem:[%s3960_s3 + $0x6b8] sm:$0xff]  ;;  %v2965_v15 = vld [vmem:[%s3960_s3 + $0x6c0] sm:$0xff] }
  0x66   :  { %4146 = vst [vmem:[#allocation188_spill] sm:$0xff] %v2960_v16  ;;  %4147 = vst [vmem:[#allocation189_spill] sm:$0xff] %v2965_v15  ;;  %v2970_v14 = vld [vmem:[%s3960_s3 + $0x6c8] sm:$0xff]  ;;  %v2975_v5 = vld [vmem:[%s3960_s3 + $0x6d0] sm:$0xff] }
  0x67   :  { %4148 = vst [vmem:[#allocation190_spill] sm:$0xff] %v2970_v14  ;;  %4149 = vst [vmem:[#allocation191_spill] sm:$0xff] %v2975_v5  ;;  %v2980_v13 = vld [vmem:[%s3960_s3 + $0x6d8] sm:$0xff]  ;;  %v2985_v16 = vld [vmem:[%s3960_s3 + $0x6e0] sm:$0xff] }
  0x68   :  { %4150 = vst [vmem:[#allocation192_spill] sm:$0xff] %v2980_v13  ;;  %4151 = vst [vmem:[#allocation193_spill] sm:$0xff] %v2985_v16  ;;  %v2990_v15 = vld [vmem:[%s3960_s3 + $0x6e8] sm:$0xff]  ;;  %v2995_v14 = vld [vmem:[%s3960_s3 + $0x6f0] sm:$0xff] }
  0x69   :  { %4152 = vst [vmem:[#allocation194_spill] sm:$0xff] %v2990_v15  ;;  %4153 = vst [vmem:[#allocation195_spill] sm:$0xff] %v2995_v14  ;;  %v3000_v5 = vld [vmem:[%s3960_s3 + $0x6f8] sm:$0xff]  ;;  %v3005_v13 = vld [vmem:[%s3960_s3 + $0x700] sm:$0xff] }
  0x6a   :  { %4154 = vst [vmem:[#allocation196_spill] sm:$0xff] %v3000_v5  ;;  %4155 = vst [vmem:[#allocation197_spill] sm:$0xff] %v3005_v13  ;;  %v3010_v16 = vld [vmem:[%s3960_s3 + $0x708] sm:$0xff]  ;;  %v3015_v15 = vld [vmem:[%s3960_s3 + $0x710] sm:$0xff] }
  0x6b   :  { %4156 = vst [vmem:[#allocation198_spill] sm:$0xff] %v3010_v16  ;;  %4157 = vst [vmem:[#allocation199_spill] sm:$0xff] %v3015_v15  ;;  %v3020_v14 = vld [vmem:[%s3960_s3 + $0x718] sm:$0xff]  ;;  %v3025_v5 = vld [vmem:[%s3960_s3 + $0x720] sm:$0xff] }
  0x6c   :  { %4158 = vst [vmem:[#allocation200_spill] sm:$0xff] %v3020_v14  ;;  %4159 = vst [vmem:[#allocation201_spill] sm:$0xff] %v3025_v5  ;;  %v3030_v13 = vld [vmem:[%s3960_s3 + $0x728] sm:$0xff]  ;;  %v3035_v16 = vld [vmem:[%s3960_s3 + $0x730] sm:$0xff] }
  0x6d   :  { %4160 = vst [vmem:[#allocation202_spill] sm:$0xff] %v3030_v13  ;;  %4161 = vst [vmem:[#allocation203_spill] sm:$0xff] %v3035_v16  ;;  %v3040_v15 = vld [vmem:[%s3960_s3 + $0x738] sm:$0xff]  ;;  %v3045_v14 = vld [vmem:[%s3960_s3 + $0x740] sm:$0xff] }
  0x6e   :  { %4162 = vst [vmem:[#allocation204_spill] sm:$0xff] %v3040_v15  ;;  %4163 = vst [vmem:[#allocation205_spill] sm:$0xff] %v3045_v14  ;;  %v3050_v5 = vld [vmem:[%s3960_s3 + $0x748] sm:$0xff]  ;;  %v3055_v13 = vld [vmem:[%s3960_s3 + $0x750] sm:$0xff] }
  0x6f   :  { %4164 = vst [vmem:[#allocation206_spill] sm:$0xff] %v3050_v5  ;;  %4165 = vst [vmem:[#allocation207_spill] sm:$0xff] %v3055_v13  ;;  %v3060_v16 = vld [vmem:[%s3960_s3 + $0x758] sm:$0xff]  ;;  %v3065_v15 = vld [vmem:[%s3960_s3 + $0x760] sm:$0xff] }
  0x70   :  { %4166 = vst [vmem:[#allocation208_spill] sm:$0xff] %v3060_v16  ;;  %4167 = vst [vmem:[#allocation209_spill] sm:$0xff] %v3065_v15  ;;  %v3070_v14 = vld [vmem:[%s3960_s3 + $0x768] sm:$0xff]  ;;  %v3075_v5 = vld [vmem:[%s3960_s3 + $0x770] sm:$0xff] }
  0x71   :  { %4168 = vst [vmem:[#allocation210_spill] sm:$0xff] %v3070_v14  ;;  %4169 = vst [vmem:[#allocation211_spill] sm:$0xff] %v3075_v5  ;;  %v3080_v13 = vld [vmem:[%s3960_s3 + $0x778] sm:$0xff]  ;;  %v3085_v16 = vld [vmem:[%s3960_s3 + $0x780] sm:$0xff] }
  0x72   :  { %4170 = vst [vmem:[#allocation212_spill] sm:$0xff] %v3080_v13  ;;  %4171 = vst [vmem:[#allocation213_spill] sm:$0xff] %v3085_v16  ;;  %v3090_v15 = vld [vmem:[%s3960_s3 + $0x788] sm:$0xff]  ;;  %v3095_v14 = vld [vmem:[%s3960_s3 + $0x790] sm:$0xff] }
  0x73   :  { %4172 = vst [vmem:[#allocation214_spill] sm:$0xff] %v3090_v15  ;;  %4173 = vst [vmem:[#allocation215_spill] sm:$0xff] %v3095_v14  ;;  %v3100_v5 = vld [vmem:[%s3960_s3 + $0x798] sm:$0xff]  ;;  %v3105_v13 = vld [vmem:[%s3960_s3 + $0x7a0] sm:$0xff] }
  0x74   :  { %4174 = vst [vmem:[#allocation216_spill] sm:$0xff] %v3100_v5  ;;  %4175 = vst [vmem:[#allocation217_spill] sm:$0xff] %v3105_v13  ;;  %v3110_v16 = vld [vmem:[%s3960_s3 + $0x7a8] sm:$0xff]  ;;  %v3115_v15 = vld [vmem:[%s3960_s3 + $0x7b0] sm:$0xff] }
  0x75   :  { %4176 = vst [vmem:[#allocation218_spill] sm:$0xff] %v3110_v16  ;;  %4177 = vst [vmem:[#allocation219_spill] sm:$0xff] %v3115_v15  ;;  %v3120_v14 = vld [vmem:[%s3960_s3 + $0x7b8] sm:$0xff]  ;;  %v3125_v5 = vld [vmem:[%s3960_s3 + $0x7c0] sm:$0xff] }
  0x76   :  { %4178 = vst [vmem:[#allocation220_spill] sm:$0xff] %v3120_v14  ;;  %4179 = vst [vmem:[#allocation221_spill] sm:$0xff] %v3125_v5  ;;  %v3130_v13 = vld [vmem:[%s3960_s3 + $0x7c8] sm:$0xff]  ;;  %v3135_v16 = vld [vmem:[%s3960_s3 + $0x7d0] sm:$0xff] }
  0x77   :  { %4180 = vst [vmem:[#allocation222_spill] sm:$0xff] %v3130_v13  ;;  %4181 = vst [vmem:[#allocation223_spill] sm:$0xff] %v3135_v16  ;;  %v3140_v15 = vld [vmem:[%s3960_s3 + $0x7d8] sm:$0xff]  ;;  %v3145_v14 = vld [vmem:[%s3960_s3 + $0x7e0] sm:$0xff]  ;;  %v319_v16 = vlaneseq }
  0x78   :  { %4182 = vst [vmem:[#allocation224_spill] sm:$0xff] %v3140_v15  ;;  %4183 = vst [vmem:[#allocation225_spill] sm:$0xff] %v3145_v14  ;;  %v3150_v5 = vld [vmem:[%s3960_s3 + $0x7e8] sm:$0xff]  ;;  %v3155_v13 = vld [vmem:[%s3960_s3 + $0x7f0] sm:$0xff] }
  0x79   :  { %4184 = vst [vmem:[#allocation226_spill] sm:$0xff] %v3150_v5  ;;  %4185 = vst [vmem:[#allocation227_spill] sm:$0xff] %v3155_v13  ;;  %v3160_v15 = vld [vmem:[%s3960_s3 + $0x7f8] sm:$0xff]  ;;  %v3165_v14 = vld [vmem:[%s3960_s3 + $0x800] sm:$0xff] }
  0x7a   :  { %4186 = vst [vmem:[#allocation228_spill] sm:$0xff] %v3160_v15  ;;  %4187 = vst [vmem:[#allocation229_spill] sm:$0xff] %v3165_v14  ;;  %v3170_v5 = vld [vmem:[%s3960_s3 + $0x808] sm:$0xff]  ;;  %v3175_v13 = vld [vmem:[%s3960_s3 + $0x810] sm:$0xff] }
  0x7b   :  { %4188 = vst [vmem:[#allocation230_spill] sm:$0xff] %v3170_v5  ;;  %4189 = vst [vmem:[#allocation231_spill] sm:$0xff] %v3175_v13  ;;  %v3180_v4 = vld [vmem:[%s3960_s3 + $0x818] sm:$0xff]  ;;  %v3185_v15 = vld [vmem:[%s3960_s3 + $0x820] sm:$0xff] }
  0x7c   :  { %4190 = vst [vmem:[#allocation232_spill] sm:$0xff] %v3180_v4  ;;  %4191 = vst [vmem:[#allocation233_spill] sm:$0xff] %v3185_v15  ;;  %v3190_v14 = vld [vmem:[%s3960_s3 + $0x828] sm:$0xff]  ;;  %v3195_v5 = vld [vmem:[%s3960_s3 + $0x830] sm:$0xff] }
  0x7d   :  { %4192 = vst [vmem:[#allocation234_spill] sm:$0xff] %v3190_v14  ;;  %4193 = vst [vmem:[#allocation235_spill] sm:$0xff] %v3195_v5  ;;  %v3200_v13 = vld [vmem:[%s3960_s3 + $0x838] sm:$0xff]  ;;  %v3205_v4 = vld [vmem:[%s3960_s3 + $0x840] sm:$0xff]  ;;  %v320_v5 = vshrl.u32 %v319_v16, 7 }
  0x7e   :  { %4194 = vst [vmem:[#allocation236_spill] sm:$0xff] %v3200_v13  ;;  %4195 = vst [vmem:[#allocation237_spill] sm:$0xff] %v3205_v4  ;;  %v3210_v15 = vld [vmem:[%s3960_s3 + $0x848] sm:$0xff]  ;;  %v3215_v14 = vld [vmem:[%s3960_s3 + $0x850] sm:$0xff] }
  0x7f   :  { %4196 = vst [vmem:[#allocation238_spill] sm:$0xff] %v3210_v15  ;;  %4197 = vst [vmem:[#allocation239_spill] sm:$0xff] %v3215_v14  ;;  %v3220_v13 = vld [vmem:[%s3960_s3 + $0x858] sm:$0xff]  ;;  %v3225_v4 = vld [vmem:[%s3960_s3 + $0x860] sm:$0xff]  ;;  %v325_v7 = vsub.s32 1, %v320_v5  ;;  %v329_v6 = vsub.s32 2, %v320_v5 }
  0x80   :  { %4198 = vst [vmem:[#allocation240_spill] sm:$0xff] %v3220_v13  ;;  %4199 = vst [vmem:[#allocation241_spill] sm:$0xff] %v3225_v4  ;;  %v3230_v15 = vld [vmem:[%s3960_s3 + $0x868] sm:$0xff]  ;;  %v3235_v14 = vld [vmem:[%s3960_s3 + $0x870] sm:$0xff]  ;;  %v333_v32 = vsub.s32 3, %v320_v5  ;;  %v341_v34 = vsub.s32 5, %v320_v5 }
  0x81   :  { %4200 = vst [vmem:[#allocation242_spill] sm:$0xff] %v3230_v15  ;;  %4201 = vst [vmem:[#allocation243_spill] sm:$0xff] %v3235_v14  ;;  %v3240_v16 = vld [vmem:[%s3960_s3 + $0x878] sm:$0xff]  ;;  %v3245_v13 = vld [vmem:[%s3960_s3 + $0x880] sm:$0xff]  ;;  %v349_v33 = vsub.s32 7, %v320_v5 }
  0x82   :  { %4202 = vst [vmem:[#allocation244_spill] sm:$0xff] %v3240_v16  ;;  %4203 = vst [vmem:[#allocation245_spill] sm:$0xff] %v3245_v13  ;;  %v3250_v4 = vld [vmem:[%s3960_s3 + $0x888] sm:$0xff]  ;;  %v3255_v15 = vld [vmem:[%s3960_s3 + $0x890] sm:$0xff] }
  0x83   :  { %4204 = vst [vmem:[#allocation246_spill] sm:$0xff] %v3250_v4  ;;  %4205 = vst [vmem:[#allocation247_spill] sm:$0xff] %v3255_v15  ;;  %v3260_v14 = vld [vmem:[%s3960_s3 + $0x898] sm:$0xff]  ;;  %v3265_v16 = vld [vmem:[%s3960_s3 + $0x8a0] sm:$0xff]  ;;  %v321_v15 = vsub.s32 0, %v320_v5 }
  0x84   :  { %4206 = vst [vmem:[#allocation248_spill] sm:$0xff] %v3260_v14  ;;  %4207 = vst [vmem:[#allocation249_spill] sm:$0xff] %v3265_v16  ;;  %v3270_v13 = vld [vmem:[%s3960_s3 + $0x8a8] sm:$0xff]  ;;  %v3275_v4 = vld [vmem:[%s3960_s3 + $0x8b0] sm:$0xff] }
  0x85   :  { %4208 = vst [vmem:[#allocation250_spill] sm:$0xff] %v3270_v13  ;;  %4209 = vst [vmem:[#allocation251_spill] sm:$0xff] %v3275_v4  ;;  %v3280_v14 = vld [vmem:[%s3960_s3 + $0x8b8] sm:$0xff]  ;;  %v3285_v16 = vld [vmem:[%s3960_s3 + $0x8c0] sm:$0xff]  ;;  %v337_v4 = vsub.s32 4, %v320_v5 }
  0x86   :  { %4210 = vst [vmem:[#allocation252_spill] sm:$0xff] %v3280_v14  ;;  %4211 = vst [vmem:[#allocation253_spill] sm:$0xff] %v3285_v16  ;;  %v3290_v13 = vld [vmem:[%s3960_s3 + $0x8c8] sm:$0xff]  ;;  %v3295_v31 = vld [vmem:[%s3960_s3 + $0x8d0] sm:$0xff]  ;;  %1120 = sbr.rel (%p1133_p2) target bundleno = 542 (0x21e), region = 46 }
  0x87   :  { %4212 = vst [vmem:[#allocation254_spill] sm:$0xff] %v3290_v13  ;;  %4213 = vst [vmem:[#allocation255_spill] sm:$0xff] %v3295_v31  ;;  %v3300_v14 = vld [vmem:[%s3960_s3 + $0x8d8] sm:$0xff]  ;;  %v3305_v16 = vld [vmem:[%s3960_s3 + $0x8e0] sm:$0xff]  ;;  %v345_v13 = vsub.s32 6, %v320_v5 }
  0x88   :  { %4214 = vst [vmem:[#allocation256_spill] sm:$0xff] %v3300_v14  ;;  %4215 = vst [vmem:[#allocation257_spill] sm:$0xff] %v3305_v16  ;;  %v3310_v23 = vld [vmem:[%s3960_s3 + $0x8e8] sm:$0xff]  ;;  %v3315_v31 = vld [vmem:[%s3960_s3 + $0x8f0] sm:$0xff] }
  0x89   :  { %4216 = vst [vmem:[#allocation258_spill] sm:$0xff] %v3310_v23  ;;  %4217 = vst [vmem:[#allocation259_spill] sm:$0xff] %v3315_v31  ;;  %v3320_v14 = vld [vmem:[%s3960_s3 + $0x8f8] sm:$0xff]  ;;  %v315_v16 = vld [vmem:[%s3963_s4] sm:$0xff] }
  0x8a   :  { %4218 = vst [vmem:[#allocation260_spill] sm:$0xff] %v3320_v14  ;;  %v3328_v5 = vld [vmem:[%s3963_s4 + $0x8] ss:$0 sm:$0xff]  ;;  %v3333_v23 = vld [vmem:[%s3962_s1] sm:$0xff]  ;;  %v3335_v31 = vrot.slane %v315_v16, %v321_v15  ;;  %v3337_v22 = vrot.slane %v315_v16, %v325_v7  ;;  %v3339_v25 = vrot.slane %v315_v16, %v329_v6  ;;  %v3341_v14 = vrot.slane %v315_v16, %v333_v32  ;;  %s3360_s1 = smov (!%p1133_p2), 0  }
  0x8b   :  { %4219 = vst [vmem:[#allocation261_spill] sm:$0xff] %v3328_v5  ;;  %v3343_v24 = vrot.slane %v315_v16, %v337_v4  ;;  %v3345_v50 = vrot.slane %v315_v16, %v341_v34  ;;  %v3347_v49 = vrot.slane %v315_v16, %v345_v13  ;;  %v3349_v5 = vrot.slane %v315_v16, %v349_v33 }
  0x8c   :  { %4220 = vst [vmem:[#allocation262_spill] sm:$0xff] %v3337_v22  ;;  %v3354_v15 = vmov 0.0   ;;  %v3356_v7 = vmov (!%p1133_p2), 0.0   ;;  %v3358_v6 = vmov (!%p1133_p2), 0.0  }
  0x8d LB: > { %v4221_v1 = vld [vmem:[#allocation7_spill] sm:$0xff]  ;;  %v4222_v10 = vld [vmem:[#allocation14_spill] sm:$0xff]  ;;  %v1278_v13 = vpack.c.bf16 %v1939_v12, %v1888_v3  ;;  %v4224_v9 = vld [vmem:[#allocation13_spill] sm:$0xff]  ;;  %v1280_v33 = vpack.c.bf16 %v1934_v11, %v1880_v2  ;;  %v1282_v52 = vpack.c.bf16 %v2035_v30, %v1990_v21  ;;  %v1284_v15 = vpack.c.bf16 %v2030_v29, %v1985_v20  ;;  %445 = vmatprep.mubr.f32.mxu0 %v1819_v7  ;;  %s1143_s3 = smul.u32 24, %s1827_s1  ;;  %p766_p3 = scmp.ge.s32.totalorder %s1827_s1, 1  ;;  %s1827_s1 = sphi %s3360_s1, %s375_s1   ;;  %v1823_v6 = vphi %v3358_v6, %v4479_v6   ;;  %v1819_v7 = vphi %v3356_v7, %v4478_v7  }
  0x8e   : > { %v1214_v4 = vpack.c.bf16 %v4222_v10, %v4221_v1  ;;  %v4223_v0 = vld [vmem:[#allocation6_spill] sm:$0xff]  ;;  %v4225_v19 = vld [vmem:[#allocation21_spill] sm:$0xff]  ;;  %v4226_v28 = vld [vmem:[#allocation28_spill] sm:$0xff]  ;;  %v1286_v1 = vpack.c.bf16 %v2125_v48, %v2080_v39  ;;  %516 = vmatprep.mubr.f32.mxu1 %v1819_v7 }
  0x8f   : > { %v1216_v32 = vpack.c.bf16 %v4224_v9, %v4223_v0  ;;  %v1218_v34 = vpack.c.bf16 %v4226_v28, %v4225_v19  ;;  %1279 = vmatprep.subr.bf16.mxu1 %v1278_v13  ;;  %v4227_v18 = vld [vmem:[#allocation20_spill] sm:$0xff]  ;;  %v4228_v27 = vld [vmem:[#allocation27_spill] sm:$0xff]  ;;  %v4230_v36 = vld [vmem:[#allocation34_spill] sm:$0xff]  ;;  %v1288_v13 = vpack.c.bf16 %v2120_v47, %v2075_v38  ;;  %s737_s8 = scalar_lea.vmem %s3959_s2, %s1143_s3 }
  0x90   : > { %1215 = vmatprep.subr.bf16.mxu0 %v1214_v4  ;;  %1281 = vmatpush1.bf16.msra.mxu1 %v1280_v33  ;;  %v1220_v16 = vpack.c.bf16 %v4228_v27, %v4227_v18  ;;  %v4229_v37 = vld [vmem:[#allocation35_spill] sm:$0xff]  ;;  %v1224_v4 = vpack.c.bf16 %v2110_v45, %v4230_v36  ;;  %v1290_v33 = vpack.c.bf16 %v2215_v35, %v2170_v57  ;;  %v4231_v42 = vld [vmem:[#allocation66_spill] sm:$0xff]  ;;  %v4239_v19 = vld [vmem:[#allocation93_spill] sm:$0xff]  ;;  %s767_s9 = scalar_select %p766_p3, 1, 0 }
  0x91   : > { %1217 = vmatpush1.bf16.msra.mxu0 %v1216_v32  ;;  %1283 = vmatprep.subr.bf16.mxu1 %v1282_v52  ;;  %v1222_v0 = vpack.c.bf16 %v2115_v46, %v4229_v37  ;;  %v1226_v32 = vpack.c.bf16 %v2205_v53, %v2160_v55  ;;  %v1292_v52 = vpack.c.bf16 %v2210_v44, %v2165_v56  ;;  %v4232_v43 = vld [vmem:[#allocation74_spill] sm:$0xff]  ;;  %v4237_v18 = vld [vmem:[#allocation91_spill] sm:$0xff]  ;;  %v4240_v28 = vld [vmem:[#allocation81_spill] sm:$0xff] }
  0x92   : > { %1219 = vmatprep.subr.bf16.mxu0 %v1218_v34  ;;  %v1228_v34 = vpack.c.bf16 %v2200_v63, %v2155_v54  ;;  %v4236_v10 = vld [vmem:[#allocation82_spill] sm:$0xff]  ;;  %v4243_v37 = vld [vmem:[#allocation92_spill] sm:$0xff] }
  0x93   : > { %v4241_v36 = vld [vmem:[#allocation90_spill] sm:$0xff] }
  0x94   : > { %1285 = vmatpush1.bf16.msra.mxu1 %v1284_v15  ;;  %v1296_v15 = vpack.c.bf16 %v2300_v26, %v2255_v17  ;;  %v4476_v22 = vld [vmem:[#allocation262_spill] sm:$0xff] }
  0x95   : > { %1221 = vmatpush1.bf16.msra.mxu0 %v1220_v16  ;;  %1287 = vmatprep.subr.bf16.mxu1 %v1286_v1  ;;  %v1294_v1 = vpack.c.bf16 %v2305_v59, %v2260_v8  ;;  %v1232_v16 = vpack.c.bf16 %v2290_v60, %v2245_v62 }
  0x96   : > { %1223 = vmatprep.subr.bf16.mxu0 %v1222_v0  ;;  %v1230_v0 = vpack.c.bf16 %v2295_v61, %v2250_v58 }
  0x98   : > { %1289 = vmatpush1.bf16.msra.mxu1 %v1288_v13  ;;  %v1298_v13 = vpack.c.bf16 %v2395_v41, %v2350_v40 }
  0x99   : > { %1225 = vmatpush1.bf16.msra.mxu0 %v1224_v4  ;;  %1291 = vmatprep.subr.bf16.mxu1 %v1290_v33  ;;  %v1234_v4 = vpack.c.bf16 %v4232_v43, %v4231_v42 }
  0x9a   : > { %1227 = vmatprep.subr.bf16.mxu0 %v1226_v32  ;;  %v4233_v32 = vld [vmem:[#allocation73_spill] sm:$0xff] }
  0x9b   : > { %v1236_v33 = vpack.c.bf16 %v4233_v32, %v2335_v51  ;;  %v4244_v32 = vld [vmem:[#allocation100_spill] sm:$0xff] }
  0x9c   : > { %1293 = vmatpush1.bf16.msra.mxu1 %v1292_v52  ;;  %v4235_v52 = vld [vmem:[#allocation75_spill] sm:$0xff] }
  0x9d   : > { %1229 = vmatpush1.bf16.msra.mxu0 %v1228_v34  ;;  %1295 = vmatprep.subr.bf16.mxu1 %v1294_v1  ;;  %v4234_v34 = vld [vmem:[#allocation67_spill] sm:$0xff]  ;;  %v4238_v1 = vld [vmem:[#allocation84_spill] sm:$0xff] }
  0x9e   : > { %1231 = vmatprep.subr.bf16.mxu0 %v1230_v0  ;;  %v1300_v9 = vpack.c.bf16 %v4235_v52, %v4234_v34  ;;  %v1238_v0 = vpack.c.bf16 %v4237_v18, %v4236_v10  ;;  %v1302_v27 = vpack.c.bf16 %v4239_v19, %v4238_v1  ;;  %v4245_v34 = vld [vmem:[#allocation109_spill] sm:$0xff]  ;;  %v4247_v52 = vld [vmem:[#allocation111_spill] sm:$0xff]  ;;  %v4249_v18 = vld [vmem:[#allocation108_spill] sm:$0xff] }
  0x9f   : > { %v4248_v10 = vld [vmem:[#allocation99_spill] sm:$0xff] }
  0xa0   : > { %1297 = vmatpush1.bf16.msra.mxu1 %v1296_v15  ;;  %v4242_v15 = vld [vmem:[#allocation83_spill] sm:$0xff]  ;;  %v1244_v19 = vpack.c.bf16 %v4249_v18, %v4248_v10  ;;  %v4260_v10 = vld [vmem:[#allocation136_spill] sm:$0xff]  ;;  %v4261_v18 = vld [vmem:[#allocation145_spill] sm:$0xff] }
  0xa1   : > { %1233 = vmatpush1.bf16.msra.mxu0 %v1232_v16  ;;  %1299 = vmatprep.subr.bf16.mxu1 %v1298_v13  ;;  %v1240_v16 = vpack.c.bf16 %v4241_v36, %v4240_v28  ;;  %v1304_v42 = vpack.c.bf16 %v4243_v37, %v4242_v15  ;;  %v4246_v13 = vld [vmem:[#allocation102_spill] sm:$0xff]  ;;  %v4253_v36 = vld [vmem:[#allocation127_spill] sm:$0xff] }
  0xa2   : > { %1235 = vmatprep.subr.bf16.mxu0 %v1234_v4  ;;  %v1242_v4 = vpack.c.bf16 %v4245_v34, %v4244_v32  ;;  %v1306_v43 = vpack.c.bf16 %v4247_v52, %v4246_v13  ;;  %v4252_v28 = vld [vmem:[#allocation118_spill] sm:$0xff]  ;;  %v4256_v32 = vld [vmem:[#allocation117_spill] sm:$0xff]  ;;  %v4259_v13 = vld [vmem:[#allocation128_spill] sm:$0xff] }
  0xa3   : > { %v1246_v37 = vpack.c.bf16 %v4253_v36, %v4252_v28  ;;  %v4257_v34 = vld [vmem:[#allocation126_spill] sm:$0xff]  ;;  %v4264_v28 = vld [vmem:[#allocation135_spill] sm:$0xff]  ;;  %v4265_v36 = vld [vmem:[#allocation144_spill] sm:$0xff] }
  0xa4   : > { %1301 = vmatpush1.bf16.msra.mxu1 %v1300_v9  ;;  %v4250_v9 = vld [vmem:[#allocation101_spill] sm:$0xff] }
  0xa5   : > { %1237 = vmatpush1.bf16.msra.mxu0 %v1236_v33  ;;  %1303 = vmatprep.subr.bf16.mxu1 %v1302_v27  ;;  %v4251_v33 = vld [vmem:[#allocation110_spill] sm:$0xff]  ;;  %v4254_v27 = vld [vmem:[#allocation120_spill] sm:$0xff] }
  0xa6   : > { %1239 = vmatprep.subr.bf16.mxu0 %v1238_v0  ;;  %v1308_v1 = vpack.c.bf16 %v4251_v33, %v4250_v9  ;;  %v4255_v0 = vld [vmem:[#allocation129_spill] sm:$0xff]  ;;  %v4263_v9 = vld [vmem:[#allocation147_spill] sm:$0xff] }
  0xa7   : > { %v1310_v15 = vpack.c.bf16 %v4255_v0, %v4254_v27  ;;  %v4267_v27 = vld [vmem:[#allocation146_spill] sm:$0xff] }
  0xa8   : > { %1305 = vmatpush1.bf16.msra.mxu1 %v1304_v42  ;;  %v4258_v42 = vld [vmem:[#allocation119_spill] sm:$0xff] }
  0xa9   : > { %1241 = vmatpush1.bf16.msra.mxu0 %v1240_v16  ;;  %1307 = vmatprep.subr.bf16.mxu1 %v1306_v43  ;;  %v1248_v16 = vpack.c.bf16 %v4257_v34, %v4256_v32  ;;  %v1312_v52 = vpack.c.bf16 %v4259_v13, %v4258_v42  ;;  %v4262_v43 = vld [vmem:[#allocation138_spill] sm:$0xff]  ;;  %v4269_v34 = vld [vmem:[#allocation163_spill] sm:$0xff]  ;;  %v4271_v42 = vld [vmem:[#allocation165_spill] sm:$0xff] }
  0xaa   : > { %1243 = vmatprep.subr.bf16.mxu0 %v1242_v4  ;;  %v1250_v4 = vpack.c.bf16 %v4261_v18, %v4260_v10  ;;  %v1314_v33 = vpack.c.bf16 %v4263_v9, %v4262_v43  ;;  %v4268_v32 = vld [vmem:[#allocation154_spill] sm:$0xff]  ;;  %v4272_v10 = vld [vmem:[#allocation153_spill] sm:$0xff]  ;;  %v4275_v43 = vld [vmem:[#allocation164_spill] sm:$0xff] }
  0xab   : > { %v4273_v18 = vld [vmem:[#allocation162_spill] sm:$0xff] }
  0xac   : > { %1309 = vmatpush1.bf16.msra.mxu1 %v1308_v1  ;;  %v4266_v1 = vld [vmem:[#allocation137_spill] sm:$0xff] }
  0xad   : > { %1245 = vmatpush1.bf16.msra.mxu0 %v1244_v19  ;;  %1311 = vmatprep.subr.bf16.mxu1 %v1310_v15  ;;  %v1252_v19 = vpack.c.bf16 %v4265_v36, %v4264_v28  ;;  %v1316_v0 = vpack.c.bf16 %v4267_v27, %v4266_v1  ;;  %v4270_v15 = vld [vmem:[#allocation156_spill] sm:$0xff]  ;;  %v4277_v36 = vld [vmem:[#allocation181_spill] sm:$0xff]  ;;  %v4279_v1 = vld [vmem:[#allocation183_spill] sm:$0xff] }
  0xae   : > { %1247 = vmatprep.subr.bf16.mxu0 %v1246_v37  ;;  %v1254_v37 = vpack.c.bf16 %v4269_v34, %v4268_v32  ;;  %v1318_v13 = vpack.c.bf16 %v4271_v42, %v4270_v15  ;;  %v4276_v28 = vld [vmem:[#allocation172_spill] sm:$0xff]  ;;  %v4280_v32 = vld [vmem:[#allocation171_spill] sm:$0xff]  ;;  %v4283_v15 = vld [vmem:[#allocation182_spill] sm:$0xff] }
  0xaf   : > { %v4281_v34 = vld [vmem:[#allocation180_spill] sm:$0xff] }
  0xb0   : > { %1313 = vmatpush1.bf16.msra.mxu1 %v1312_v52  ;;  %v4274_v52 = vld [vmem:[#allocation155_spill] sm:$0xff] }
  0xb1   : > { %1249 = vmatpush1.bf16.msra.mxu0 %v1248_v16  ;;  %1315 = vmatprep.subr.bf16.mxu1 %v1314_v33  ;;  %v1256_v16 = vpack.c.bf16 %v4273_v18, %v4272_v10  ;;  %v1320_v9 = vpack.c.bf16 %v4275_v43, %v4274_v52  ;;  %v4278_v33 = vld [vmem:[#allocation174_spill] sm:$0xff]  ;;  %v4285_v18 = vld [vmem:[#allocation199_spill] sm:$0xff]  ;;  %v4287_v52 = vld [vmem:[#allocation201_spill] sm:$0xff] }
  0xb2   : > { %1251 = vmatprep.subr.bf16.mxu0 %v1250_v4  ;;  %v1258_v4 = vpack.c.bf16 %v4277_v36, %v4276_v28  ;;  %v1322_v27 = vpack.c.bf16 %v4279_v1, %v4278_v33  ;;  %v4284_v10 = vld [vmem:[#allocation190_spill] sm:$0xff]  ;;  %v4288_v28 = vld [vmem:[#allocation189_spill] sm:$0xff]  ;;  %v4291_v33 = vld [vmem:[#allocation200_spill] sm:$0xff] }
  0xb3   : > { %v4289_v36 = vld [vmem:[#allocation198_spill] sm:$0xff] }
  0xb4   : > { %1317 = vmatpush1.bf16.msra.mxu1 %v1316_v0  ;;  %v4282_v0 = vld [vmem:[#allocation173_spill] sm:$0xff] }
  0xb5   : > { %1253 = vmatpush1.bf16.msra.mxu0 %v1252_v19  ;;  %1319 = vmatprep.subr.bf16.mxu1 %v1318_v13  ;;  %v1260_v19 = vpack.c.bf16 %v4281_v34, %v4280_v32  ;;  %v1324_v42 = vpack.c.bf16 %v4283_v15, %v4282_v0  ;;  %v4286_v13 = vld [vmem:[#allocation192_spill] sm:$0xff]  ;;  %v4293_v34 = vld [vmem:[#allocation217_spill] sm:$0xff]  ;;  %v4295_v0 = vld [vmem:[#allocation219_spill] sm:$0xff] }
  0xb6   : > { %1255 = vmatprep.subr.bf16.mxu0 %v1254_v37  ;;  %v1262_v37 = vpack.c.bf16 %v4285_v18, %v4284_v10  ;;  %v1326_v43 = vpack.c.bf16 %v4287_v52, %v4286_v13  ;;  %v4292_v32 = vld [vmem:[#allocation208_spill] sm:$0xff]  ;;  %v4296_v10 = vld [vmem:[#allocation207_spill] sm:$0xff]  ;;  %v4299_v13 = vld [vmem:[#allocation218_spill] sm:$0xff] }
  0xb7   : > { %v4297_v18 = vld [vmem:[#allocation216_spill] sm:$0xff] }
  0xb8   : > { %1321 = vmatpush1.bf16.msra.mxu1 %v1320_v9  ;;  %v4290_v9 = vld [vmem:[#allocation191_spill] sm:$0xff] }
  0xb9   : > { %1257 = vmatpush1.bf16.msra.mxu0 %v1256_v16  ;;  %1323 = vmatprep.subr.bf16.mxu1 %v1322_v27  ;;  %v1264_v16 = vpack.c.bf16 %v4289_v36, %v4288_v28  ;;  %v1328_v1 = vpack.c.bf16 %v4291_v33, %v4290_v9  ;;  %v4294_v27 = vld [vmem:[#allocation210_spill] sm:$0xff]  ;;  %v4301_v36 = vld [vmem:[#allocation235_spill] sm:$0xff]  ;;  %v4303_v9 = vld [vmem:[#allocation237_spill] sm:$0xff] }
  0xba   : > { %1259 = vmatprep.subr.bf16.mxu0 %v1258_v4  ;;  %v1266_v4 = vpack.c.bf16 %v4293_v34, %v4292_v32  ;;  %v1330_v15 = vpack.c.bf16 %v4295_v0, %v4294_v27  ;;  %v4300_v28 = vld [vmem:[#allocation226_spill] sm:$0xff]  ;;  %v4304_v32 = vld [vmem:[#allocation225_spill] sm:$0xff]  ;;  %v4307_v27 = vld [vmem:[#allocation236_spill] sm:$0xff] }
  0xbb   : > { %v4305_v34 = vld [vmem:[#allocation234_spill] sm:$0xff] }
  0xbc   : > { %1325 = vmatpush1.bf16.msra.mxu1 %v1324_v42  ;;  %v4298_v42 = vld [vmem:[#allocation209_spill] sm:$0xff] }
  0xbd   : > { %1261 = vmatpush1.bf16.msra.mxu0 %v1260_v19  ;;  %1327 = vmatprep.subr.bf16.mxu1 %v1326_v43  ;;  %v1268_v19 = vpack.c.bf16 %v4297_v18, %v4296_v10  ;;  %v1332_v52 = vpack.c.bf16 %v4299_v13, %v4298_v42  ;;  %v4302_v43 = vld [vmem:[#allocation228_spill] sm:$0xff]  ;;  %v4309_v18 = vld [vmem:[#allocation253_spill] sm:$0xff]  ;;  %v4311_v42 = vld [vmem:[#allocation255_spill] sm:$0xff] }
  0xbe   : > { %1263 = vmatprep.subr.bf16.mxu0 %v1262_v37  ;;  %v1270_v37 = vpack.c.bf16 %v4301_v36, %v4300_v28  ;;  %v1334_v33 = vpack.c.bf16 %v4303_v9, %v4302_v43  ;;  %v4308_v10 = vld [vmem:[#allocation244_spill] sm:$0xff]  ;;  %v4312_v28 = vld [vmem:[#allocation243_spill] sm:$0xff]  ;;  %v4315_v43 = vld [vmem:[#allocation254_spill] sm:$0xff] }
  0xbf   : > { %v4313_v36 = vld [vmem:[#allocation252_spill] sm:$0xff] }
  0xc0   : > { %1329 = vmatpush1.bf16.msra.mxu1 %v1328_v1  ;;  %v4306_v1 = vld [vmem:[#allocation227_spill] sm:$0xff] }
  0xc1   : > { %1265 = vmatpush1.bf16.msra.mxu0 %v1264_v16  ;;  %1331 = vmatprep.subr.bf16.mxu1 %v1330_v15  ;;  %v1272_v16 = vpack.c.bf16 %v4305_v34, %v4304_v32  ;;  %v1336_v0 = vpack.c.bf16 %v4307_v27, %v4306_v1  ;;  %v4310_v15 = vld [vmem:[#allocation246_spill] sm:$0xff]  ;;  %v4316_v32 = vld [vmem:[#allocation9_spill] sm:$0xff]  ;;  %v4317_v34 = vld [vmem:[#allocation16_spill] sm:$0xff] }
  0xc2   : > { %1267 = vmatprep.subr.bf16.mxu0 %v1266_v4  ;;  %v1274_v4 = vpack.c.bf16 %v4309_v18, %v4308_v10  ;;  %v1338_v13 = vpack.c.bf16 %v4311_v42, %v4310_v15  ;;  %v4319_v1 = vld [vmem:[#allocation18_spill] sm:$0xff]  ;;  %v4320_v10 = vld [vmem:[#allocation8_spill] sm:$0xff]  ;;  %v4321_v18 = vld [vmem:[#allocation15_spill] sm:$0xff] }
  0xc3   : > { %v4323_v15 = vld [vmem:[#allocation17_spill] sm:$0xff] }
  0xc4   : > { %1333 = vmatpush1.bf16.msra.mxu1 %v1332_v52  ;;  %v4314_v52 = vld [vmem:[#allocation245_spill] sm:$0xff] }
  0xc5   : > { %1269 = vmatpush1.bf16.msra.mxu0 %v1268_v19  ;;  %1335 = vmatprep.subr.bf16.mxu1 %v1334_v33  ;;  %v1276_v19 = vpack.c.bf16 %v4313_v36, %v4312_v28  ;;  %v1340_v9 = vpack.c.bf16 %v4315_v43, %v4314_v52  ;;  %v4318_v33 = vld [vmem:[#allocation11_spill] sm:$0xff]  ;;  %v4325_v36 = vld [vmem:[#allocation30_spill] sm:$0xff]  ;;  %v4327_v52 = vld [vmem:[#allocation32_spill] sm:$0xff] }
  0xc6   : > { %1271 = vmatprep.subr.bf16.mxu0 %v1270_v37  ;;  %v1342_v37 = vpack.c.bf16 %v4317_v34, %v4316_v32  ;;  %v1406_v27 = vpack.c.bf16 %v4319_v1, %v4318_v33  ;;  %v4324_v28 = vld [vmem:[#allocation23_spill] sm:$0xff]  ;;  %v4330_v34 = vld [vmem:[#allocation24_spill] sm:$0xff] }
  0xc7   : > { %v4331_v33 = vld [vmem:[#allocation31_spill] sm:$0xff] }
  0xc8   : > { %1337 = vmatpush1.bf16.msra.mxu1 %v1336_v0  ;;  %v4322_v0 = vld [vmem:[#allocation10_spill] sm:$0xff]  ;;  %v1412_v1 = vpack.c.bf16 %v4331_v33, %v4330_v34 }
  0xc9   : > { %1273 = vmatpush1.bf16.msra.mxu0 %v1272_v16  ;;  %1339 = vmatprep.subr.bf16.mxu1 %v1338_v13  ;;  %v1344_v16 = vpack.c.bf16 %v4321_v18, %v4320_v10  ;;  %v1408_v42 = vpack.c.bf16 %v4323_v15, %v4322_v0  ;;  %v4326_v13 = vld [vmem:[#allocation25_spill] sm:$0xff]  ;;  %v4334_v18 = vld [vmem:[#allocation39_spill] sm:$0xff]  ;;  %v4335_v0 = vld [vmem:[#allocation44_spill] sm:$0xff] }
  0xca   : > { %1275 = vmatprep.subr.bf16.mxu0 %v1274_v4  ;;  %v1346_v4 = vpack.c.bf16 %v4325_v36, %v4324_v28  ;;  %v1410_v43 = vpack.c.bf16 %v4327_v52, %v4326_v13  ;;  %v1414_v15 = vpack.c.bf16 %v4335_v0, %v4334_v18  ;;  %v4338_v36 = vld [vmem:[#allocation38_spill] sm:$0xff]  ;;  %v4339_v13 = vld [vmem:[#allocation43_spill] sm:$0xff]  ;;  %v4347_v18 = vld [vmem:[#allocation53_spill] sm:$0xff] }
  0xcb   : > { %v1416_v52 = vpack.c.bf16 %v4339_v13, %v4338_v36  ;;  %v4343_v34 = vld [vmem:[#allocation54_spill] sm:$0xff]  ;;  %v4351_v36 = vld [vmem:[#allocation64_spill] sm:$0xff] }
  0xcc   : > { %1341 = vmatpush1.bf16.msra.mxu1 %v1340_v9  ;;  %v4329_v9 = vld [vmem:[#allocation29_spill] sm:$0xff] }
  0xcd   : > { %1277 = vmatpush1.bf16.msra.mxu0 %v1276_v19  ;;  %1407 = vmatprep.subr.bf16.mxu1 %v1406_v27  ;;  %v4328_v19 = vld [vmem:[#allocation22_spill] sm:$0xff] }
  0xce   : > { %1343 = vmatprep.subr.bf16.mxu0 %v1342_v37  ;;  %v1348_v32 = vpack.c.bf16 %v4329_v9, %v4328_v19  ;;  %v4332_v37 = vld [vmem:[#allocation37_spill] sm:$0xff]  ;;  %v4333_v27 = vld [vmem:[#allocation42_spill] sm:$0xff] }
  0xcf   : > { %517 = vmatmul.mubr.f32.vlgmr.msra.gmra.mrb[0].mxu1 %v1823_v6  ;;  %v1350_v10 = vpack.c.bf16 %v4333_v27, %v4332_v37  ;;  %v4342_v9 = vld [vmem:[#allocation49_spill] sm:$0xff]  ;;  %v4344_v37 = vld [vmem:[#allocation46_spill] sm:$0xff]  ;;  %v4345_v27 = vld [vmem:[#allocation51_spill] sm:$0xff] }
  0xd0   : > { %446 = vmatmul.mubr.f32.vlgmr.msra.gmra.mrb[0].mxu0 %v1823_v6  ;;  %1409 = vmatpush1.bf16.msra.mxu1 %v1408_v42  ;;  %v4337_v42 = vld [vmem:[#allocation41_spill] sm:$0xff]  ;;  %v1418_v33 = vpack.c.bf16 %v4343_v34, %v4342_v9  ;;  %v4355_v9 = vld [vmem:[#allocation63_spill] sm:$0xff] }
  0xd1   : > { %1345 = vmatpush1.bf16.msra.mxu0 %v1344_v16  ;;  %1411 = vmatprep.subr.bf16.mxu1 %v1410_v43  ;;  %v4336_v16 = vld [vmem:[#allocation36_spill] sm:$0xff] }
  0xd2   : > { %1347 = vmatprep.subr.bf16.mxu0 %v1346_v4  ;;  %587 = vmatprep.mubr.f32.mxu0 %v1819_v7  ;;  %v1352_v28 = vpack.c.bf16 %v4337_v42, %v4336_v16  ;;  %v4340_v4 = vld [vmem:[#allocation47_spill] sm:$0xff]  ;;  %v4341_v43 = vld [vmem:[#allocation52_spill] sm:$0xff]  ;;  %v4348_v16 = vld [vmem:[#allocation57_spill] sm:$0xff] }
  0xd3   : > { %658 = vmatprep.mubr.f32.mxu1 %v1819_v7  ;;  %v1354_v19 = vpack.c.bf16 %v4341_v43, %v4340_v4  ;;  %v4349_v42 = vld [vmem:[#allocation62_spill] sm:$0xff]  ;;  %v4352_v4 = vld [vmem:[#allocation56_spill] sm:$0xff]  ;;  %v4353_v43 = vld [vmem:[#allocation61_spill] sm:$0xff] }
  0xd4   : > { %1413 = vmatpush1.bf16.msra.mxu1 %v1412_v1  ;;  %v4346_v1 = vld [vmem:[#allocation48_spill] sm:$0xff] }
  0xd5   : > { %1349 = vmatpush1.bf16.msra.mxu0 %v1348_v32  ;;  %1415 = vmatprep.subr.bf16.mxu1 %v1414_v15  ;;  %v1356_v32 = vpack.c.bf16 %v4345_v27, %v4344_v37  ;;  %v1420_v0 = vpack.c.bf16 %v4347_v18, %v4346_v1  ;;  %v4350_v15 = vld [vmem:[#allocation59_spill] sm:$0xff]  ;;  %v4356_v37 = vld [vmem:[#allocation69_spill] sm:$0xff] }
  0xd6   : > { %1351 = vmatprep.subr.bf16.mxu0 %v1350_v10  ;;  %v1358_v10 = vpack.c.bf16 %v4349_v42, %v4348_v16  ;;  %v1422_v13 = vpack.c.bf16 %v4351_v36, %v4350_v15  ;;  %v4357_v27 = vld [vmem:[#allocation77_spill] sm:$0xff]  ;;  %v4359_v1 = vld [vmem:[#allocation79_spill] sm:$0xff]  ;;  %v4360_v16 = vld [vmem:[#allocation68_spill] sm:$0xff] }
  0xd7   : > { %v4361_v42 = vld [vmem:[#allocation76_spill] sm:$0xff]  ;;  %v4363_v15 = vld [vmem:[#allocation78_spill] sm:$0xff] }
  0xd8   : > { %1417 = vmatpush1.bf16.msra.mxu1 %v1416_v52  ;;  %v4354_v52 = vld [vmem:[#allocation58_spill] sm:$0xff] }
  0xd9   : > { %1353 = vmatpush1.bf16.msra.mxu0 %v1352_v28  ;;  %1419 = vmatprep.subr.bf16.mxu1 %v1418_v33  ;;  %v1360_v28 = vpack.c.bf16 %v4353_v43, %v4352_v4  ;;  %v1424_v34 = vpack.c.bf16 %v4355_v9, %v4354_v52  ;;  %v4358_v33 = vld [vmem:[#allocation71_spill] sm:$0xff]  ;;  %v4364_v4 = vld [vmem:[#allocation86_spill] sm:$0xff]  ;;  %v4367_v52 = vld [vmem:[#allocation97_spill] sm:$0xff] }
  0xda   : > { %1355 = vmatprep.subr.bf16.mxu0 %v1354_v19  ;;  %v1362_v19 = vpack.c.bf16 %v4357_v27, %v4356_v37  ;;  %v1426_v18 = vpack.c.bf16 %v4359_v1, %v4358_v33  ;;  %v4365_v43 = vld [vmem:[#allocation95_spill] sm:$0xff]  ;;  %v4368_v37 = vld [vmem:[#allocation85_spill] sm:$0xff]  ;;  %v4369_v27 = vld [vmem:[#allocation94_spill] sm:$0xff] }
  0xdb   : > { %v4371_v33 = vld [vmem:[#allocation96_spill] sm:$0xff] }
  0xdc   : > { %1421 = vmatpush1.bf16.msra.mxu1 %v1420_v0  ;;  %v4362_v0 = vld [vmem:[#allocation70_spill] sm:$0xff] }
  0xdd   : > { %1357 = vmatpush1.bf16.msra.mxu0 %v1356_v32  ;;  %1423 = vmatprep.subr.bf16.mxu1 %v1422_v13  ;;  %v1364_v32 = vpack.c.bf16 %v4361_v42, %v4360_v16  ;;  %v1428_v36 = vpack.c.bf16 %v4363_v15, %v4362_v0  ;;  %v4366_v13 = vld [vmem:[#allocation88_spill] sm:$0xff]  ;;  %v4373_v42 = vld [vmem:[#allocation113_spill] sm:$0xff]  ;;  %v4375_v0 = vld [vmem:[#allocation115_spill] sm:$0xff] }
  0xde   : > { %1359 = vmatprep.subr.bf16.mxu0 %v1358_v10  ;;  %v1366_v10 = vpack.c.bf16 %v4365_v43, %v4364_v4  ;;  %v1430_v9 = vpack.c.bf16 %v4367_v52, %v4366_v13  ;;  %v4372_v16 = vld [vmem:[#allocation104_spill] sm:$0xff]  ;;  %v4376_v4 = vld [vmem:[#allocation103_spill] sm:$0xff]  ;;  %v4379_v13 = vld [vmem:[#allocation114_spill] sm:$0xff] }
  0xdf   : > { %v4377_v43 = vld [vmem:[#allocation112_spill] sm:$0xff] }
  0xe0   : > { %1425 = vmatpush1.bf16.msra.mxu1 %v1424_v34  ;;  %v4370_v34 = vld [vmem:[#allocation87_spill] sm:$0xff] }
  0xe1   : > { %1361 = vmatpush1.bf16.msra.mxu0 %v1360_v28  ;;  %1427 = vmatprep.subr.bf16.mxu1 %v1426_v18  ;;  %v1368_v28 = vpack.c.bf16 %v4369_v27, %v4368_v37  ;;  %v1432_v1 = vpack.c.bf16 %v4371_v33, %v4370_v34  ;;  %v4374_v18 = vld [vmem:[#allocation106_spill] sm:$0xff]  ;;  %v4381_v27 = vld [vmem:[#allocation131_spill] sm:$0xff]  ;;  %v4383_v34 = vld [vmem:[#allocation133_spill] sm:$0xff] }
  0xe2   : > { %1363 = vmatprep.subr.bf16.mxu0 %v1362_v19  ;;  %v1370_v19 = vpack.c.bf16 %v4373_v42, %v4372_v16  ;;  %v1434_v15 = vpack.c.bf16 %v4375_v0, %v4374_v18  ;;  %v4380_v37 = vld [vmem:[#allocation122_spill] sm:$0xff]  ;;  %v4384_v16 = vld [vmem:[#allocation121_spill] sm:$0xff]  ;;  %v4387_v18 = vld [vmem:[#allocation132_spill] sm:$0xff] }
  0xe3   : > { %v4385_v42 = vld [vmem:[#allocation130_spill] sm:$0xff] }
  0xe4   : > { %1429 = vmatpush1.bf16.msra.mxu1 %v1428_v36  ;;  %v4378_v36 = vld [vmem:[#allocation105_spill] sm:$0xff] }
  0xe5   : > { %1365 = vmatpush1.bf16.msra.mxu0 %v1364_v32  ;;  %1431 = vmatprep.subr.bf16.mxu1 %v1430_v9  ;;  %v1372_v32 = vpack.c.bf16 %v4377_v43, %v4376_v4  ;;  %v1436_v52 = vpack.c.bf16 %v4379_v13, %v4378_v36  ;;  %v4382_v9 = vld [vmem:[#allocation124_spill] sm:$0xff]  ;;  %v4389_v43 = vld [vmem:[#allocation149_spill] sm:$0xff]  ;;  %v4391_v36 = vld [vmem:[#allocation151_spill] sm:$0xff] }
  0xe6   : > { %1367 = vmatprep.subr.bf16.mxu0 %v1366_v10  ;;  %v1374_v10 = vpack.c.bf16 %v4381_v27, %v4380_v37  ;;  %v1438_v33 = vpack.c.bf16 %v4383_v34, %v4382_v9  ;;  %v4388_v4 = vld [vmem:[#allocation140_spill] sm:$0xff]  ;;  %v4392_v37 = vld [vmem:[#allocation139_spill] sm:$0xff]  ;;  %v4395_v9 = vld [vmem:[#allocation150_spill] sm:$0xff] }
  0xe7   : > { %v4393_v27 = vld [vmem:[#allocation148_spill] sm:$0xff] }
  0xe8   : > { %1433 = vmatpush1.bf16.msra.mxu1 %v1432_v1  ;;  %v4386_v1 = vld [vmem:[#allocation123_spill] sm:$0xff] }
  0xe9   : > { %1369 = vmatpush1.bf16.msra.mxu0 %v1368_v28  ;;  %1435 = vmatprep.subr.bf16.mxu1 %v1434_v15  ;;  %v1376_v28 = vpack.c.bf16 %v4385_v42, %v4384_v16  ;;  %v1440_v0 = vpack.c.bf16 %v4387_v18, %v4386_v1  ;;  %v4390_v15 = vld [vmem:[#allocation142_spill] sm:$0xff]  ;;  %v4397_v42 = vld [vmem:[#allocation167_spill] sm:$0xff]  ;;  %v4399_v1 = vld [vmem:[#allocation169_spill] sm:$0xff] }
  0xea   : > { %1371 = vmatprep.subr.bf16.mxu0 %v1370_v19  ;;  %v1378_v19 = vpack.c.bf16 %v4389_v43, %v4388_v4  ;;  %v1442_v13 = vpack.c.bf16 %v4391_v36, %v4390_v15  ;;  %v4396_v16 = vld [vmem:[#allocation158_spill] sm:$0xff]  ;;  %v4400_v4 = vld [vmem:[#allocation157_spill] sm:$0xff]  ;;  %v4403_v15 = vld [vmem:[#allocation168_spill] sm:$0xff] }
  0xeb   : > { %v4401_v43 = vld [vmem:[#allocation166_spill] sm:$0xff] }
  0xec   : > { %1437 = vmatpush1.bf16.msra.mxu1 %v1436_v52  ;;  %v4394_v52 = vld [vmem:[#allocation141_spill] sm:$0xff] }
  0xed   : > { %1373 = vmatpush1.bf16.msra.mxu0 %v1372_v32  ;;  %1439 = vmatprep.subr.bf16.mxu1 %v1438_v33  ;;  %v1380_v32 = vpack.c.bf16 %v4393_v27, %v4392_v37  ;;  %v1444_v34 = vpack.c.bf16 %v4395_v9, %v4394_v52  ;;  %v4398_v33 = vld [vmem:[#allocation160_spill] sm:$0xff]  ;;  %v4405_v27 = vld [vmem:[#allocation185_spill] sm:$0xff]  ;;  %v4407_v52 = vld [vmem:[#allocation187_spill] sm:$0xff] }
  0xee   : > { %1375 = vmatprep.subr.bf16.mxu0 %v1374_v10  ;;  %v1382_v10 = vpack.c.bf16 %v4397_v42, %v4396_v16  ;;  %v1446_v18 = vpack.c.bf16 %v4399_v1, %v4398_v33  ;;  %v4404_v37 = vld [vmem:[#allocation176_spill] sm:$0xff]  ;;  %v4408_v16 = vld [vmem:[#allocation175_spill] sm:$0xff]  ;;  %v4411_v33 = vld [vmem:[#allocation186_spill] sm:$0xff] }
  0xef   : > { %v4409_v42 = vld [vmem:[#allocation184_spill] sm:$0xff] }
  0xf0   : > { %1441 = vmatpush1.bf16.msra.mxu1 %v1440_v0  ;;  %v4402_v0 = vld [vmem:[#allocation159_spill] sm:$0xff] }
  0xf1   : > { %1377 = vmatpush1.bf16.msra.mxu0 %v1376_v28  ;;  %1443 = vmatprep.subr.bf16.mxu1 %v1442_v13  ;;  %v1384_v28 = vpack.c.bf16 %v4401_v43, %v4400_v4  ;;  %v1448_v36 = vpack.c.bf16 %v4403_v15, %v4402_v0  ;;  %v4406_v13 = vld [vmem:[#allocation178_spill] sm:$0xff]  ;;  %v4413_v43 = vld [vmem:[#allocation203_spill] sm:$0xff]  ;;  %v4415_v0 = vld [vmem:[#allocation205_spill] sm:$0xff] }
  0xf2   : > { %1379 = vmatprep.subr.bf16.mxu0 %v1378_v19  ;;  %v1386_v19 = vpack.c.bf16 %v4405_v27, %v4404_v37  ;;  %v1450_v9 = vpack.c.bf16 %v4407_v52, %v4406_v13  ;;  %v4412_v4 = vld [vmem:[#allocation194_spill] sm:$0xff]  ;;  %v4416_v37 = vld [vmem:[#allocation193_spill] sm:$0xff]  ;;  %v4419_v13 = vld [vmem:[#allocation204_spill] sm:$0xff] }
  0xf3   : > { %v4417_v27 = vld [vmem:[#allocation202_spill] sm:$0xff] }
  0xf4   : > { %1445 = vmatpush1.bf16.msra.mxu1 %v1444_v34  ;;  %v4410_v34 = vld [vmem:[#allocation177_spill] sm:$0xff] }
  0xf5   : > { %1381 = vmatpush1.bf16.msra.mxu0 %v1380_v32  ;;  %1447 = vmatprep.subr.bf16.mxu1 %v1446_v18  ;;  %v1388_v32 = vpack.c.bf16 %v4409_v42, %v4408_v16  ;;  %v1452_v1 = vpack.c.bf16 %v4411_v33, %v4410_v34  ;;  %v4414_v18 = vld [vmem:[#allocation196_spill] sm:$0xff]  ;;  %v4421_v42 = vld [vmem:[#allocation221_spill] sm:$0xff]  ;;  %v4423_v34 = vld [vmem:[#allocation223_spill] sm:$0xff] }
  0xf6   : > { %1383 = vmatprep.subr.bf16.mxu0 %v1382_v10  ;;  %v1390_v10 = vpack.c.bf16 %v4413_v43, %v4412_v4  ;;  %v1454_v15 = vpack.c.bf16 %v4415_v0, %v4414_v18  ;;  %v4420_v16 = vld [vmem:[#allocation212_spill] sm:$0xff]  ;;  %v4424_v4 = vld [vmem:[#allocation211_spill] sm:$0xff]  ;;  %v4427_v18 = vld [vmem:[#allocation222_spill] sm:$0xff] }
  0xf7   : > { %v4425_v43 = vld [vmem:[#allocation220_spill] sm:$0xff] }
  0xf8   : > { %1449 = vmatpush1.bf16.msra.mxu1 %v1448_v36  ;;  %v4418_v36 = vld [vmem:[#allocation195_spill] sm:$0xff] }
  0xf9   : > { %1385 = vmatpush1.bf16.msra.mxu0 %v1384_v28  ;;  %1451 = vmatprep.subr.bf16.mxu1 %v1450_v9  ;;  %v1392_v28 = vpack.c.bf16 %v4417_v27, %v4416_v37  ;;  %v1456_v52 = vpack.c.bf16 %v4419_v13, %v4418_v36  ;;  %v4422_v9 = vld [vmem:[#allocation214_spill] sm:$0xff]  ;;  %v4429_v27 = vld [vmem:[#allocation239_spill] sm:$0xff]  ;;  %v4431_v36 = vld [vmem:[#allocation241_spill] sm:$0xff] }
  0xfa   : > { %1387 = vmatprep.subr.bf16.mxu0 %v1386_v19  ;;  %v1394_v19 = vpack.c.bf16 %v4421_v42, %v4420_v16  ;;  %v1458_v33 = vpack.c.bf16 %v4423_v34, %v4422_v9  ;;  %v4428_v37 = vld [vmem:[#allocation230_spill] sm:$0xff]  ;;  %v4432_v16 = vld [vmem:[#allocation229_spill] sm:$0xff]  ;;  %v4435_v9 = vld [vmem:[#allocation240_spill] sm:$0xff] }
  0xfb   : > { %v4433_v42 = vld [vmem:[#allocation238_spill] sm:$0xff] }
  0xfc   : > { %1453 = vmatpush1.bf16.msra.mxu1 %v1452_v1  ;;  %v4426_v1 = vld [vmem:[#allocation213_spill] sm:$0xff] }
  0xfd   : > { %1389 = vmatpush1.bf16.msra.mxu0 %v1388_v32  ;;  %1455 = vmatprep.subr.bf16.mxu1 %v1454_v15  ;;  %v1396_v32 = vpack.c.bf16 %v4425_v43, %v4424_v4  ;;  %v1460_v0 = vpack.c.bf16 %v4427_v18, %v4426_v1  ;;  %v4430_v15 = vld [vmem:[#allocation232_spill] sm:$0xff]  ;;  %v4437_v43 = vld [vmem:[#allocation257_spill] sm:$0xff]  ;;  %v4439_v1 = vld [vmem:[#allocation259_spill] sm:$0xff] }
  0xfe   : > { %1391 = vmatprep.subr.bf16.mxu0 %v1390_v10  ;;  %v1398_v10 = vpack.c.bf16 %v4429_v27, %v4428_v37  ;;  %v1462_v13 = vpack.c.bf16 %v4431_v36, %v4430_v15  ;;  %v4436_v4 = vld [vmem:[#allocation248_spill] sm:$0xff]  ;;  %v4440_v37 = vld [vmem:[#allocation247_spill] sm:$0xff]  ;;  %v4443_v15 = vld [vmem:[#allocation258_spill] sm:$0xff] }
  0xff   : > { %v4441_v27 = vld [vmem:[#allocation256_spill] sm:$0xff] }
 0x100   : > { %1457 = vmatpush1.bf16.msra.mxu1 %v1456_v52  ;;  %v4434_v52 = vld [vmem:[#allocation231_spill] sm:$0xff] }
 0x101   : > { %1393 = vmatpush1.bf16.msra.mxu0 %v1392_v28  ;;  %1459 = vmatprep.subr.bf16.mxu1 %v1458_v33  ;;  %v1400_v28 = vpack.c.bf16 %v4433_v42, %v4432_v16  ;;  %v1464_v34 = vpack.c.bf16 %v4435_v9, %v4434_v52  ;;  %v4438_v33 = vld [vmem:[#allocation250_spill] sm:$0xff]  ;;  %v4444_v16 = vld [vmem:[#allocation125_spill] sm:$0xff]  ;;  %v4447_v52 = vld [vmem:[#allocation19_spill] sm:$0xff] }
 0x102   : > { %1395 = vmatprep.subr.bf16.mxu0 %v1394_v19  ;;  %v1402_v19 = vpack.c.bf16 %v4437_v43, %v4436_v4  ;;  %v1466_v18 = vpack.c.bf16 %v4439_v1, %v4438_v33  ;;  %v4445_v42 = vld [vmem:[#allocation134_spill] sm:$0xff]  ;;  %v4448_v4 = vld [vmem:[#allocation143_spill] sm:$0xff]  ;;  %v4452_v1 = vld [vmem:[#allocation161_spill] sm:$0xff] }
 0x103   : > { %v4450_v43 = vld [vmem:[#allocation26_spill] sm:$0xff] }
 0x104   : > { %1461 = vmatpush1.bf16.msra.mxu1 %v1460_v0  ;;  %v4442_v0 = vld [vmem:[#allocation249_spill] sm:$0xff] }
 0x105   : > { %1397 = vmatpush1.bf16.msra.mxu0 %v1396_v32  ;;  %1463 = vmatprep.subr.bf16.mxu1 %v1462_v13  ;;  %v1404_v32 = vpack.c.bf16 %v4441_v27, %v4440_v37  ;;  %v1468_v36 = vpack.c.bf16 %v4443_v15, %v4442_v0  ;;  %v4446_v13 = vld [vmem:[#allocation12_spill] sm:$0xff]  ;;  %v4456_v15 = vld [vmem:[#allocation179_spill] sm:$0xff] }
 0x106   : > { %1399 = vmatprep.subr.bf16.mxu0 %v1398_v10  ;;  %v1470_v10 = vpack.c.bf16 %v4445_v42, %v4444_v16  ;;  %v1472_v9 = vpack.c.bf16 %v4447_v52, %v4446_v13  ;;  %v4454_v27 = vld [vmem:[#allocation40_spill] sm:$0xff]  ;;  %v4458_v42 = vld [vmem:[#allocation50_spill] sm:$0xff]  ;;  %v4460_v52 = vld [vmem:[#allocation197_spill] sm:$0xff] }
 0x108   : > { %1465 = vmatpush1.bf16.msra.mxu1 %v1464_v34 }
 0x109   : > { %1401 = vmatpush1.bf16.msra.mxu0 %v1400_v28  ;;  %1467 = vmatprep.subr.bf16.mxu1 %v1466_v18  ;;  %v4449_v28 = vld [vmem:[#allocation152_spill] sm:$0xff]  ;;  %v4453_v18 = vld [vmem:[#allocation170_spill] sm:$0xff] }
 0x10a   : > { %1403 = vmatprep.subr.bf16.mxu0 %v1402_v19  ;;  %v1474_v34 = vpack.c.bf16 %v4449_v28, %v4448_v4  ;;  %v4451_v19 = vld [vmem:[#allocation33_spill] sm:$0xff]  ;;  %v1478_v37 = vpack.c.bf16 %v4453_v18, %v4452_v1  ;;  %v4462_v28 = vld [vmem:[#allocation60_spill] sm:$0xff] }
 0x10b   : > { %v1476_v33 = vpack.c.bf16 %v4451_v19, %v4450_v43  ;;  %v4464_v19 = vld [vmem:[#allocation215_spill] sm:$0xff]  ;;  %v4466_v18 = vld [vmem:[#allocation72_spill] sm:$0xff] }
 0x10c   : > { %1469 = vmatpush1.bf16.msra.mxu1 %v1468_v36  ;;  %v4457_v36 = vld [vmem:[#allocation188_spill] sm:$0xff] }
 0x10d   : > { %1405 = vmatpush1.bf16.msra.mxu0 %v1404_v32  ;;  %v4455_v32 = vld [vmem:[#allocation45_spill] sm:$0xff]  ;;  %v1482_v16 = vpack.c.bf16 %v4457_v36, %v4456_v15 }
 0x10e   : > { %1471 = vmatprep.subr.bf16.mxu0 %v1470_v10  ;;  %v1480_v0 = vpack.c.bf16 %v4455_v32, %v4454_v27  ;;  %v4459_v10 = vld [vmem:[#allocation55_spill] sm:$0xff]  ;;  %v4468_v32 = vld [vmem:[#allocation233_spill] sm:$0xff] }
 0x10f   : > { %659 = vmatmul.mubr.f32.vlgmr.msra.gmra.mrb[2].mxu1 %v1823_v6  ;;  %v1484_v13 = vpack.c.bf16 %v4459_v10, %v4458_v42  ;;  %v4470_v36 = vld [vmem:[#allocation89_spill] sm:$0xff]  ;;  %v4472_v10 = vld [vmem:[#allocation251_spill] sm:$0xff] }
 0x110   : > { %588 = vmatmul.mubr.f32.vlgmr.msra.gmra.mrb[2].mxu0 %v1823_v6 }
 0x111   : > { %1473 = vmatpush3.bf16.msra.mxu0 %v1472_v9  ;;  %729 = vmatprep.mubr.f32.mxu0 %v1819_v7  ;;  %v4461_v9 = vld [vmem:[#allocation206_spill] sm:$0xff] }
 0x112   : > { %1475 = vmatprep.subr.bf16.mxu0 %v1474_v34  ;;  %v1486_v4 = vpack.c.bf16 %v4461_v9, %v4460_v52  ;;  %v4463_v34 = vld [vmem:[#allocation65_spill] sm:$0xff]  ;;  %v4474_v9 = vld [vmem:[#allocation107_spill] sm:$0xff] }
 0x113   : > { %v1488_v43 = vpack.c.bf16 %v4463_v34, %v4462_v28 }
 0x115   : > { %1477 = vmatpush3.bf16.msra.mxu0 %v1476_v33  ;;  %v4465_v33 = vld [vmem:[#allocation224_spill] sm:$0xff] }
 0x116   : > { %1479 = vmatprep.subr.bf16.mxu0 %v1478_v37  ;;  %v1490_v1 = vpack.c.bf16 %v4465_v33, %v4464_v19  ;;  %v4467_v37 = vld [vmem:[#allocation80_spill] sm:$0xff] }
 0x117   : > { %v1492_v27 = vpack.c.bf16 %v4467_v37, %v4466_v18 }
 0x119   : > { %1481 = vmatpush3.bf16.msra.mxu0 %v1480_v0  ;;  %v4469_v0 = vld [vmem:[#allocation242_spill] sm:$0xff] }
 0x11a   : > { %1483 = vmatprep.subr.bf16.mxu0 %v1482_v16  ;;  %v1494_v15 = vpack.c.bf16 %v4469_v0, %v4468_v32  ;;  %v4471_v16 = vld [vmem:[#allocation98_spill] sm:$0xff]  ;;  %v739_v32 = vld [vmem:[%s737_s8 + $0x8] sm:$0xff] }
 0x11b   : > { %v1496_v42 = vpack.c.bf16 %v4471_v16, %v4470_v36 }
 0x11d   : > { %1485 = vmatpush3.bf16.msra.mxu0 %v1484_v13  ;;  %v4473_v13 = vld [vmem:[#allocation260_spill] sm:$0xff] }
 0x11e   : > { %1487 = vmatprep.subr.bf16.mxu0 %v1486_v4  ;;  %v1498_v52 = vpack.c.bf16 %v4473_v13, %v4472_v10  ;;  %v4475_v4 = vld [vmem:[#allocation116_spill] sm:$0xff] }
 0x11f   : > { %v1500_v28 = vpack.c.bf16 %v4475_v4, %v4474_v9  ;;  %v740_v4 = vld [vmem:[%s737_s8 + $0x10] sm:$0xff] }
 0x121   : > { %1489 = vmatpush3.bf16.msra.mxu0 %v1488_v43  ;;  %v738_v43 = vld [vmem:[%s737_s8] sm:$0xff] }
 0x122   : > { %1491 = vmatprep.subr.bf16.mxu0 %v1490_v1 }
 0x125   : > { %1493 = vmatpush3.bf16.msra.mxu0 %v1492_v27 }
 0x126   : > { %1495 = vmatprep.subr.bf16.mxu0 %v1494_v15 }
 0x129   : > { %1497 = vmatpush3.bf16.msra.mxu0 %v1496_v42 }
 0x12a   : > { %1499 = vmatprep.subr.bf16.mxu0 %v1498_v52 }
 0x12d   : > { %1501 = vmatpush3.bf16.msra.mxu0 %v1500_v28 }
 0x130   : > { %730 = vmatmul.mubr.f32.vlgmr.msra.gmra.mrb[4].mxu0 %v1823_v6 }
 0x1a2   : > { %v518_v19 = vpop.f32.mrb[0].mxu1 }
 0x1a3   : > { %v447_v34 = vpop.f32.mrb[0].mxu0  ;;  %v520_v18 = vpop.f32.mrb[1].mxu1  ;;  %v519_v52 = vadd.f32 %v518_v19, %v3339_v25 }
 0x1a4   : > { %v448_v33 = vadd.f32 %v447_v34, %v3335_v31  ;;  %v449_v1 = vpop.f32.mrb[1].mxu0 }
 0x1a5   : > { %v450_v37 = vadd.f32 %v449_v1, %v4476_v22 }
 0x1a6   : > { %v743_v27 = vadd.f32 %v738_v43, %v448_v33  ;;  %v741_v33 = vstv %s1827_s1  ;;  %s375_s1 = sadd.s32 1, %s1827_s1  }
 0x1a7   : > { %v744_v15 = vadd.f32 %v739_v32, %v450_v37  ;;  %vm742_vm0 = vcmp.gt.s32.totalorder %v3333_v23, %v741_v33  ;;  %vm765_vm1 = vcmp.ge.s32.totalorder %v3333_v23, %v741_v33  ;;  %p374_p4 = scmp.ge.s32.totalorder %s375_s1, %s4685_s17 }
 0x1a8   : > { %v1135_v0 = vmul.f32 -1.442695, %v743_v27 }
 0x1a9   : > { %v1136_v36 = vmul.f32 -1.442695, %v744_v15 }
 0x1aa   : > { %1767 = vpow2.f32 %v1135_v0 }
 0x1ab   : > { %1769 = vpow2.f32 %v1136_v36 }
 0x1b4   : > { %v1768_v16 = vpop.eup %1767 }
 0x1b5   : > { %v751_v42 = vadd.f32 1.0, %v1768_v16  ;;  %v1770_v10 = vpop.eup %1769  ;;  %v521_v16 = vadd.f32 %v520_v18, %v3341_v14 }
 0x1b6   : > { %v752_v13 = vadd.f32 1.0, %v1770_v10 }
 0x1b7   : > { %1771 = vrcp.f32 %v751_v42 }
 0x1b8   : > { %1773 = vrcp.f32 %v752_v13 }
 0x1c1   : > { %v1772_v9 = vpop.eup %1771 }
 0x1c2   : > { %v757_v28 = vmul.f32 %v1772_v9, %v519_v52  ;;  %v1774_v43 = vpop.eup %1773 }
 0x1c3   : > { %v760_v1 = vsub.f32 1.0, %v1774_v43  ;;  %v762_v27 = vmul.f32 %v1823_v6, %v1774_v43 }
 0x1c4   : > { %v758_v34 = vadd.f32 %v757_v28, %v740_v4 }
 0x1c6   : > { %1775 = vtanh.f32 %v758_v34 }
 0x1d0   : > { %v1776_v37 = vpop.eup %1775 }
 0x1d1   : > { %v761_v32 = vmul.f32 %v1776_v37, %v760_v1 }
 0x1d3   : > { %v763_v0 = vadd.f32 %v762_v27, %v761_v32 }
 0x1d5   : > { %v764_v15 = vsel %vm742_vm0, %v763_v0, %v1823_v6  }
 0x1e2   : > { %v660_v19 = vpop.f32.mrb[2].mxu1 }
 0x1e3   : > { %v589_v36 = vpop.f32.mrb[2].mxu0  ;;  %v661_v10 = vadd.f32 %v660_v19, %v3347_v49  ;;  %v662_v52 = vpop.f32.mrb[3].mxu1 }
 0x1e4   : > { %v590_v42 = vadd.f32 %v589_v36, %v3343_v24  ;;  %v591_v13 = vpop.f32.mrb[3].mxu0  ;;  %v663_v9 = vadd.f32 %v662_v52, %v3349_v5  ;;  %v4477_v36 = vld [vmem:[#allocation261_spill] sm:$0xff] }
 0x1e5   : > { %v771_v4 = vadd.f32 %v661_v10, %v521_v16  ;;  %v592_v52 = vadd.f32 %v591_v13, %v3345_v50 }
 0x1e6   : > { %v772_v28 = vadd.f32 %v663_v9, %v590_v42  ;;  %v768_v9 = vstv %s767_s9 }
 0x1e7   : > { %v1137_v34 = vmul.f32 -1.442695, %v771_v4  ;;  %vm769_vm2 = vcmp.eq.s32.totalorder %v768_v9, 1 }
 0x1e8   : > { %v1138_v43 = vmul.f32 -1.442695, %v772_v28  ;;  %vm770_vm3 = vmand %vm765_vm1, %vm769_vm2 }
 0x1e9   : > { %1777 = vpow2.f32 %v1137_v34 }
 0x1ea   : > { %1779 = vpow2.f32 %v1138_v43 }
 0x1f3   : > { %v1778_v1 = vpop.eup %1777 }
 0x1f4   : > { %v779_v6 = vadd.f32 1.0, %v1778_v1  ;;  %v1780_v37 = vpop.eup %1779 }
 0x1f5   : > { %v780_v32 = vadd.f32 1.0, %v1780_v37 }
 0x1f6   : > { %1781 = vrcp.f32 %v779_v6  ;;  %v4479_v6 = vmov %v764_v15 }
 0x1f7   : > { %1783 = vrcp.f32 %v780_v32 }
 0x200   : > { %v1782_v22 = vpop.eup %1781 }
 0x201   : > { %v1784_v10 = vpop.eup %1783 }
 0x202   : > { %v788_v4 = vsub.f32 1.0, %v1784_v10  ;;  %v790_v34 = vmul.f32 %v1819_v7, %v1784_v10 }
 0x203   : > { %v1176_v18 = vpop.f32.mrb[4].mxu0 }
 0x204   : > { %v1177_v27 = vpop.f32.mrb[5].mxu0 }
 0x205   : > { %v1178_v0 = vadd.f32 %v1177_v27, %v1176_v18 }
 0x207   : > { %v732_v19 = vadd.f32 %v1178_v0, %v4477_v36 }
 0x209   : > { %v785_v16 = vmul.f32 %v1782_v22, %v732_v19 }
 0x20b   : > { %v786_v42 = vadd.f32 %v785_v16, %v592_v52 }
 0x20d   : > { %1785 = vtanh.f32 %v786_v42 }
 0x217   : > { %v1786_v28 = vpop.eup %1785  ;;  %377 = sbr.rel (!%p374_p4) target bundleno = 141 (0x8d), region = 52 }
 0x218   : > { %v789_v43 = vmul.f32 %v1786_v28, %v788_v4 }
 0x21a   : > { %v791_v1 = vadd.f32 %v790_v34, %v789_v43 }
 0x21c   : > { %v792_v13 = vsel %vm770_vm3, %v791_v1, %v1819_v7  }
 0x21d   : > { %v4478_v7 = vmov %v792_v13  ;;  %v4480_v52 = vmov (%p374_p4), %v792_v13 }
 0x21e PF:  { %v1502_v22 = vpack.c.bf16 %v1939_v12, %v1888_v3  ;;  %v1504_v33 = vpack.c.bf16 %v1934_v11, %v1880_v2  ;;  %v1506_v25 = vpack.c.bf16 %v2035_v30, %v1990_v21  ;;  %862 = vmatprep.mubr.f32.mxu0 %v1831_v52  ;;  %932 = vmatprep.mubr.f32.mxu1 %v1831_v52  ;;  %v4481_v3 = vld [vmem:[#allocation9_spill] sm:$0xff]  ;;  %v4482_v11 = vld [vmem:[#allocation16_spill] sm:$0xff]  ;;  %v4484_v30 = vld [vmem:[#allocation15_spill] sm:$0xff]  ;;  %p1082_p5 = scmp.ge.s32.totalorder %s3958_s0, 1  ;;  %v1835_v15 = vphi %v3354_v15, %v764_v15   ;;  %v1831_v52 = vphi %v3352_v52, %v4480_v52  }
 0x21f   :  { %v1508_v31 = vpack.c.bf16 %v2030_v29, %v1985_v20  ;;  %v1510_v45 = vpack.c.bf16 %v2125_v48, %v2080_v39  ;;  %v1512_v2 = vpack.c.bf16 %v2120_v47, %v2075_v38  ;;  %v1566_v12 = vpack.c.bf16 %v4482_v11, %v4481_v3  ;;  %v4483_v21 = vld [vmem:[#allocation8_spill] sm:$0xff]  ;;  %v4485_v53 = vld [vmem:[#allocation23_spill] sm:$0xff]  ;;  %v4486_v20 = vld [vmem:[#allocation30_spill] sm:$0xff] }
 0x220   :  { %1503 = vmatprep.subr.bf16.mxu0 %v1502_v22  ;;  %v1568_v46 = vpack.c.bf16 %v4484_v30, %v4483_v21  ;;  %v1514_v51 = vpack.c.bf16 %v2215_v35, %v2170_v57  ;;  %v1570_v29 = vpack.c.bf16 %v4486_v20, %v4485_v53  ;;  %v4487_v39 = vld [vmem:[#allocation22_spill] sm:$0xff]  ;;  %v4488_v48 = vld [vmem:[#allocation29_spill] sm:$0xff]  ;;  %v1516_v38 = vpack.c.bf16 %v2210_v44, %v2165_v56  ;;  %v4491_v57 = vld [vmem:[#allocation36_spill] sm:$0xff]  ;;  %s1083_s10 = scalar_select %p1082_p5, 1, 0 }
 0x221   :  { %1505 = vmatpush1.bf16.msra.mxu0 %v1504_v33  ;;  %1567 = vmatprep.subr.bf16.mxu1 %v1566_v12  ;;  %v1572_v54 = vpack.c.bf16 %v4488_v48, %v4487_v39  ;;  %v4489_v47 = vld [vmem:[#allocation37_spill] sm:$0xff]  ;;  %v4490_v55 = vld [vmem:[#allocation42_spill] sm:$0xff]  ;;  %v1518_v35 = vpack.c.bf16 %v2305_v59, %v2260_v8  ;;  %v1520_v62 = vpack.c.bf16 %v2300_v26, %v2255_v17  ;;  %v4493_v63 = vld [vmem:[#allocation47_spill] sm:$0xff] }
 0x222   :  { %1507 = vmatprep.subr.bf16.mxu0 %v1506_v25  ;;  %1569 = vmatpush1.bf16.msra.mxu1 %v1568_v46  ;;  %v1574_v58 = vpack.c.bf16 %v4490_v55, %v4489_v47  ;;  %v4492_v60 = vld [vmem:[#allocation41_spill] sm:$0xff]  ;;  %v4494_v7 = vld [vmem:[#allocation52_spill] sm:$0xff]  ;;  %v1522_v56 = vpack.c.bf16 %v2395_v41, %v2350_v40  ;;  %v4495_v6 = vld [vmem:[#allocation46_spill] sm:$0xff] }
 0x223   :  { %1571 = vmatprep.subr.bf16.mxu1 %v1570_v29  ;;  %v1576_v61 = vpack.c.bf16 %v4492_v60, %v4491_v57  ;;  %v1578_v44 = vpack.c.bf16 %v4494_v7, %v4493_v63  ;;  %v4496_v37 = vld [vmem:[#allocation51_spill] sm:$0xff]  ;;  %v4499_v32 = vld [vmem:[#allocation57_spill] sm:$0xff]  ;;  %v4500_v0 = vld [vmem:[#allocation62_spill] sm:$0xff] }
 0x224   :  { %v1580_v8 = vpack.c.bf16 %v4496_v37, %v4495_v6  ;;  %v4497_v59 = vld [vmem:[#allocation67_spill] sm:$0xff]  ;;  %v1582_v17 = vpack.c.bf16 %v4500_v0, %v4499_v32  ;;  %v4501_v26 = vld [vmem:[#allocation84_spill] sm:$0xff]  ;;  %v4502_v36 = vld [vmem:[#allocation93_spill] sm:$0xff] }
 0x225   :  { %1509 = vmatpush1.bf16.msra.mxu0 %v1508_v31  ;;  %v4498_v18 = vld [vmem:[#allocation75_spill] sm:$0xff]  ;;  %v1526_v19 = vpack.c.bf16 %v4502_v36, %v4501_v26  ;;  %v4503_v16 = vld [vmem:[#allocation56_spill] sm:$0xff]  ;;  %v4504_v42 = vld [vmem:[#allocation61_spill] sm:$0xff] }
 0x226   :  { %1511 = vmatprep.subr.bf16.mxu0 %v1510_v45  ;;  %1573 = vmatpush1.bf16.msra.mxu1 %v1572_v54  ;;  %v1524_v27 = vpack.c.bf16 %v4498_v18, %v4497_v59  ;;  %v1584_v40 = vpack.c.bf16 %v4504_v42, %v4503_v16  ;;  %v4505_v41 = vld [vmem:[#allocation83_spill] sm:$0xff]  ;;  %v4506_v10 = vld [vmem:[#allocation92_spill] sm:$0xff]  ;;  %v4507_v4 = vld [vmem:[#allocation69_spill] sm:$0xff] }
 0x227   :  { %1575 = vmatprep.subr.bf16.mxu1 %v1574_v58  ;;  %v1528_v9 = vpack.c.bf16 %v4506_v10, %v4505_v41  ;;  %v4508_v28 = vld [vmem:[#allocation77_spill] sm:$0xff]  ;;  %v4509_v43 = vld [vmem:[#allocation102_spill] sm:$0xff]  ;;  %v4510_v1 = vld [vmem:[#allocation111_spill] sm:$0xff] }
 0x228   :  { %v1586_v34 = vpack.c.bf16 %v4508_v28, %v4507_v4  ;;  %v1530_v13 = vpack.c.bf16 %v4510_v1, %v4509_v43  ;;  %v4511_v22 = vld [vmem:[#allocation68_spill] sm:$0xff]  ;;  %v4513_v31 = vld [vmem:[#allocation101_spill] sm:$0xff]  ;;  %v4514_v45 = vld [vmem:[#allocation110_spill] sm:$0xff] }
 0x229   :  { %1513 = vmatpush1.bf16.msra.mxu0 %v1512_v2  ;;  %v4512_v33 = vld [vmem:[#allocation76_spill] sm:$0xff]  ;;  %v1532_v2 = vpack.c.bf16 %v4514_v45, %v4513_v31  ;;  %v4515_v3 = vld [vmem:[#allocation86_spill] sm:$0xff]  ;;  %v4516_v11 = vld [vmem:[#allocation95_spill] sm:$0xff] }
 0x22a   :  { %1515 = vmatprep.subr.bf16.mxu0 %v1514_v51  ;;  %1577 = vmatpush1.bf16.msra.mxu1 %v1576_v61  ;;  %v1588_v25 = vpack.c.bf16 %v4512_v33, %v4511_v22  ;;  %v1590_v12 = vpack.c.bf16 %v4516_v11, %v4515_v3  ;;  %v4517_v21 = vld [vmem:[#allocation120_spill] sm:$0xff]  ;;  %v4518_v30 = vld [vmem:[#allocation129_spill] sm:$0xff]  ;;  %v4520_v53 = vld [vmem:[#allocation94_spill] sm:$0xff] }
 0x22b   :  { %1579 = vmatprep.subr.bf16.mxu1 %v1578_v44  ;;  %v1534_v46 = vpack.c.bf16 %v4518_v30, %v4517_v21  ;;  %v4519_v51 = vld [vmem:[#allocation85_spill] sm:$0xff]  ;;  %v4521_v29 = vld [vmem:[#allocation119_spill] sm:$0xff]  ;;  %v4522_v39 = vld [vmem:[#allocation128_spill] sm:$0xff] }
 0x22c   :  { %v1592_v20 = vpack.c.bf16 %v4520_v53, %v4519_v51  ;;  %v1536_v48 = vpack.c.bf16 %v4522_v39, %v4521_v29  ;;  %v4523_v54 = vld [vmem:[#allocation104_spill] sm:$0xff]  ;;  %v4525_v55 = vld [vmem:[#allocation138_spill] sm:$0xff]  ;;  %v4526_v58 = vld [vmem:[#allocation147_spill] sm:$0xff] }
 0x22d   :  { %1517 = vmatpush1.bf16.msra.mxu0 %v1516_v38  ;;  %v4524_v38 = vld [vmem:[#allocation113_spill] sm:$0xff]  ;;  %v4527_v57 = vld [vmem:[#allocation103_spill] sm:$0xff]  ;;  %v4528_v60 = vld [vmem:[#allocation112_spill] sm:$0xff] }
 0x22e   :  { %1519 = vmatprep.subr.bf16.mxu0 %v1518_v35  ;;  %1581 = vmatpush1.bf16.msra.mxu1 %v1580_v8  ;;  %v1594_v47 = vpack.c.bf16 %v4524_v38, %v4523_v54  ;;  %v1538_v35 = vpack.c.bf16 %v4526_v58, %v4525_v55  ;;  %v1596_v61 = vpack.c.bf16 %v4528_v60, %v4527_v57  ;;  %v4530_v63 = vld [vmem:[#allocation146_spill] sm:$0xff]  ;;  %v4533_v37 = vld [vmem:[#allocation156_spill] sm:$0xff]  ;;  %v4534_v8 = vld [vmem:[#allocation165_spill] sm:$0xff] }
 0x22f   :  { %1583 = vmatprep.subr.bf16.mxu1 %v1582_v17  ;;  %v4531_v44 = vld [vmem:[#allocation122_spill] sm:$0xff]  ;;  %v1542_v59 = vpack.c.bf16 %v4534_v8, %v4533_v37  ;;  %v4535_v18 = vld [vmem:[#allocation121_spill] sm:$0xff]  ;;  %v4537_v0 = vld [vmem:[#allocation155_spill] sm:$0xff] }
 0x230   :  { %v4538_v17 = vld [vmem:[#allocation164_spill] sm:$0xff]  ;;  %v4541_v42 = vld [vmem:[#allocation174_spill] sm:$0xff]  ;;  %v4543_v10 = vld [vmem:[#allocation139_spill] sm:$0xff] }
 0x231   :  { %1521 = vmatpush1.bf16.msra.mxu0 %v1520_v62  ;;  %v4529_v62 = vld [vmem:[#allocation137_spill] sm:$0xff]  ;;  %v1544_v26 = vpack.c.bf16 %v4538_v17, %v4537_v0  ;;  %v4539_v36 = vld [vmem:[#allocation140_spill] sm:$0xff]  ;;  %v4547_v1 = vld [vmem:[#allocation158_spill] sm:$0xff] }
 0x232   :  { %1523 = vmatprep.subr.bf16.mxu0 %v1522_v56  ;;  %1585 = vmatpush1.bf16.msra.mxu1 %v1584_v40  ;;  %v1540_v7 = vpack.c.bf16 %v4530_v63, %v4529_v62  ;;  %v4532_v56 = vld [vmem:[#allocation131_spill] sm:$0xff]  ;;  %v4545_v28 = vld [vmem:[#allocation173_spill] sm:$0xff]  ;;  %v4549_v33 = vld [vmem:[#allocation192_spill] sm:$0xff] }
 0x233   :  { %1587 = vmatprep.subr.bf16.mxu1 %v1586_v34  ;;  %v1598_v6 = vpack.c.bf16 %v4532_v56, %v4531_v44  ;;  %v4542_v40 = vld [vmem:[#allocation183_spill] sm:$0xff]  ;;  %v4546_v34 = vld [vmem:[#allocation182_spill] sm:$0xff]  ;;  %v4551_v45 = vld [vmem:[#allocation157_spill] sm:$0xff] }
 0x234   :  { %v1546_v41 = vpack.c.bf16 %v4542_v40, %v4541_v42  ;;  %v1548_v43 = vpack.c.bf16 %v4546_v34, %v4545_v28  ;;  %v4553_v11 = vld [vmem:[#allocation191_spill] sm:$0xff]  ;;  %v4555_v30 = vld [vmem:[#allocation176_spill] sm:$0xff]  ;;  %v4557_v53 = vld [vmem:[#allocation210_spill] sm:$0xff] }
 0x235   :  { %1525 = vmatpush1.bf16.msra.mxu0 %v1524_v27  ;;  %v4536_v27 = vld [vmem:[#allocation130_spill] sm:$0xff]  ;;  %v4559_v39 = vld [vmem:[#allocation175_spill] sm:$0xff]  ;;  %v4561_v38 = vld [vmem:[#allocation209_spill] sm:$0xff] }
 0x236   :  { %1527 = vmatprep.subr.bf16.mxu0 %v1526_v19  ;;  %1589 = vmatpush1.bf16.msra.mxu1 %v1588_v25  ;;  %v1600_v32 = vpack.c.bf16 %v4536_v27, %v4535_v18  ;;  %v4540_v19 = vld [vmem:[#allocation149_spill] sm:$0xff]  ;;  %v4563_v58 = vld [vmem:[#allocation194_spill] sm:$0xff]  ;;  %v4565_v60 = vld [vmem:[#allocation228_spill] sm:$0xff] }
 0x237   :  { %1591 = vmatprep.subr.bf16.mxu1 %v1590_v12  ;;  %v1602_v16 = vpack.c.bf16 %v4540_v19, %v4539_v36  ;;  %v4550_v25 = vld [vmem:[#allocation201_spill] sm:$0xff]  ;;  %v4554_v12 = vld [vmem:[#allocation200_spill] sm:$0xff]  ;;  %v4569_v56 = vld [vmem:[#allocation227_spill] sm:$0xff] }
 0x238   :  { %v1550_v31 = vpack.c.bf16 %v4550_v25, %v4549_v33  ;;  %v1552_v21 = vpack.c.bf16 %v4554_v12, %v4553_v11  ;;  %v4567_v63 = vld [vmem:[#allocation193_spill] sm:$0xff]  ;;  %v4571_v8 = vld [vmem:[#allocation212_spill] sm:$0xff]  ;;  %v4573_v27 = vld [vmem:[#allocation246_spill] sm:$0xff] }
 0x239   :  { %1529 = vmatpush1.bf16.msra.mxu0 %v1528_v9  ;;  %v4544_v9 = vld [vmem:[#allocation148_spill] sm:$0xff]  ;;  %v4575_v17 = vld [vmem:[#allocation211_spill] sm:$0xff]  ;;  %v4577_v19 = vld [vmem:[#allocation245_spill] sm:$0xff] }
 0x23a   :  { %1531 = vmatprep.subr.bf16.mxu0 %v1530_v13  ;;  %1593 = vmatpush1.bf16.msra.mxu1 %v1592_v20  ;;  %v1604_v4 = vpack.c.bf16 %v4544_v9, %v4543_v10  ;;  %v4548_v13 = vld [vmem:[#allocation167_spill] sm:$0xff]  ;;  %v4579_v40 = vld [vmem:[#allocation230_spill] sm:$0xff]  ;;  %v4583_v34 = vld [vmem:[#allocation229_spill] sm:$0xff] }
 0x23b   :  { %1595 = vmatprep.subr.bf16.mxu1 %v1594_v47  ;;  %v1606_v22 = vpack.c.bf16 %v4548_v13, %v4547_v1  ;;  %v4558_v20 = vld [vmem:[#allocation219_spill] sm:$0xff]  ;;  %v4562_v47 = vld [vmem:[#allocation218_spill] sm:$0xff]  ;;  %v4587_v25 = vld [vmem:[#allocation248_spill] sm:$0xff] }
 0x23c   :  { %v1554_v29 = vpack.c.bf16 %v4558_v20, %v4557_v53  ;;  %v1556_v55 = vpack.c.bf16 %v4562_v47, %v4561_v38  ;;  %v4581_v9 = vld [vmem:[#allocation11_spill] sm:$0xff]  ;;  %v4585_v13 = vld [vmem:[#allocation10_spill] sm:$0xff]  ;;  %v4595_v20 = vld [vmem:[#allocation125_spill] sm:$0xff] }
 0x23d   :  { %1533 = vmatpush1.bf16.msra.mxu0 %v1532_v2  ;;  %v4552_v2 = vld [vmem:[#allocation166_spill] sm:$0xff]  ;;  %v4591_v12 = vld [vmem:[#allocation247_spill] sm:$0xff]  ;;  %v4599_v47 = vld [vmem:[#allocation12_spill] sm:$0xff] }
 0x23e   :  { %1535 = vmatprep.subr.bf16.mxu0 %v1534_v46  ;;  %1597 = vmatpush1.bf16.msra.mxu1 %v1596_v61  ;;  %v1608_v3 = vpack.c.bf16 %v4552_v2, %v4551_v45  ;;  %v4556_v46 = vld [vmem:[#allocation185_spill] sm:$0xff] }
 0x23f   :  { %1599 = vmatprep.subr.bf16.mxu1 %v1598_v6  ;;  %v1610_v51 = vpack.c.bf16 %v4556_v46, %v4555_v30  ;;  %v4566_v61 = vld [vmem:[#allocation237_spill] sm:$0xff]  ;;  %v4570_v6 = vld [vmem:[#allocation236_spill] sm:$0xff] }
 0x240   :  { %v1558_v62 = vpack.c.bf16 %v4566_v61, %v4565_v60  ;;  %v1560_v37 = vpack.c.bf16 %v4570_v6, %v4569_v56  ;;  %v4589_v2 = vld [vmem:[#allocation25_spill] sm:$0xff]  ;;  %v4593_v46 = vld [vmem:[#allocation24_spill] sm:$0xff]  ;;  %v4603_v61 = vld [vmem:[#allocation143_spill] sm:$0xff] }
 0x241   :  { %1537 = vmatpush1.bf16.msra.mxu0 %v1536_v48  ;;  %v4560_v48 = vld [vmem:[#allocation184_spill] sm:$0xff]  ;;  %v4607_v6 = vld [vmem:[#allocation26_spill] sm:$0xff] }
 0x242   :  { %1539 = vmatprep.subr.bf16.mxu0 %v1538_v35  ;;  %1601 = vmatpush1.bf16.msra.mxu1 %v1600_v32  ;;  %v1612_v54 = vpack.c.bf16 %v4560_v48, %v4559_v39  ;;  %v4564_v35 = vld [vmem:[#allocation203_spill] sm:$0xff] }
 0x243   :  { %1603 = vmatprep.subr.bf16.mxu1 %v1602_v16  ;;  %v1614_v57 = vpack.c.bf16 %v4564_v35, %v4563_v58  ;;  %v4574_v32 = vld [vmem:[#allocation255_spill] sm:$0xff]  ;;  %v4578_v16 = vld [vmem:[#allocation254_spill] sm:$0xff] }
 0x244   :  { %v1562_v0 = vpack.c.bf16 %v4574_v32, %v4573_v27  ;;  %v1564_v42 = vpack.c.bf16 %v4578_v16, %v4577_v19  ;;  %v4597_v48 = vld [vmem:[#allocation39_spill] sm:$0xff]  ;;  %v4601_v35 = vld [vmem:[#allocation38_spill] sm:$0xff]  ;;  %v4611_v32 = vld [vmem:[#allocation161_spill] sm:$0xff] }
 0x245   :  { %1541 = vmatpush1.bf16.msra.mxu0 %v1540_v7  ;;  %v4568_v7 = vld [vmem:[#allocation202_spill] sm:$0xff]  ;;  %v4615_v16 = vld [vmem:[#allocation40_spill] sm:$0xff] }
 0x246   :  { %1543 = vmatprep.subr.bf16.mxu0 %v1542_v59  ;;  %1605 = vmatpush1.bf16.msra.mxu1 %v1604_v4  ;;  %v1616_v44 = vpack.c.bf16 %v4568_v7, %v4567_v63  ;;  %v4572_v59 = vld [vmem:[#allocation221_spill] sm:$0xff]  ;;  %v4582_v4 = vld [vmem:[#allocation18_spill] sm:$0xff] }
 0x247   :  { %1607 = vmatprep.subr.bf16.mxu1 %v1606_v22  ;;  %v1618_v18 = vpack.c.bf16 %v4572_v59, %v4571_v8  ;;  %v1630_v28 = vpack.c.bf16 %v4582_v4, %v4581_v9  ;;  %v4586_v22 = vld [vmem:[#allocation17_spill] sm:$0xff]  ;;  %v4609_v59 = vld [vmem:[#allocation48_spill] sm:$0xff]  ;;  %v4619_v4 = vld [vmem:[#allocation179_spill] sm:$0xff] }
 0x248   :  { %v1632_v33 = vpack.c.bf16 %v4586_v22, %v4585_v13  ;;  %v4605_v7 = vld [vmem:[#allocation49_spill] sm:$0xff]  ;;  %v4623_v22 = vld [vmem:[#allocation50_spill] sm:$0xff] }
 0x249   :  { %1545 = vmatpush1.bf16.msra.mxu0 %v1544_v26  ;;  %v4576_v26 = vld [vmem:[#allocation220_spill] sm:$0xff] }
 0x24a   :  { %1547 = vmatprep.subr.bf16.mxu0 %v1546_v41  ;;  %1609 = vmatpush1.bf16.msra.mxu1 %v1608_v3  ;;  %v1620_v36 = vpack.c.bf16 %v4576_v26, %v4575_v17  ;;  %v4580_v41 = vld [vmem:[#allocation239_spill] sm:$0xff]  ;;  %v4590_v3 = vld [vmem:[#allocation32_spill] sm:$0xff] }
 0x24b   :  { %1611 = vmatprep.subr.bf16.mxu1 %v1610_v51  ;;  %v1622_v10 = vpack.c.bf16 %v4580_v41, %v4579_v40  ;;  %v1634_v11 = vpack.c.bf16 %v4590_v3, %v4589_v2  ;;  %v4594_v51 = vld [vmem:[#allocation31_spill] sm:$0xff]  ;;  %v4617_v41 = vld [vmem:[#allocation58_spill] sm:$0xff]  ;;  %v4627_v3 = vld [vmem:[#allocation197_spill] sm:$0xff] }
 0x24c   :  { %v1636_v53 = vpack.c.bf16 %v4594_v51, %v4593_v46  ;;  %v4613_v26 = vld [vmem:[#allocation59_spill] sm:$0xff]  ;;  %v4631_v51 = vld [vmem:[#allocation60_spill] sm:$0xff] }
 0x24d   :  { %1549 = vmatpush1.bf16.msra.mxu0 %v1548_v43  ;;  %v4584_v43 = vld [vmem:[#allocation238_spill] sm:$0xff] }
 0x24e   :  { %1551 = vmatprep.subr.bf16.mxu0 %v1550_v31  ;;  %1613 = vmatpush1.bf16.msra.mxu1 %v1612_v54  ;;  %v1624_v1 = vpack.c.bf16 %v4584_v43, %v4583_v34  ;;  %v4588_v31 = vld [vmem:[#allocation257_spill] sm:$0xff]  ;;  %v4598_v54 = vld [vmem:[#allocation44_spill] sm:$0xff]  ;;  %v4621_v43 = vld [vmem:[#allocation71_spill] sm:$0xff] }
 0x24f   :  { %1615 = vmatprep.subr.bf16.mxu1 %v1614_v57  ;;  %v1626_v45 = vpack.c.bf16 %v4588_v31, %v4587_v25  ;;  %v1638_v38 = vpack.c.bf16 %v4598_v54, %v4597_v48  ;;  %v4602_v57 = vld [vmem:[#allocation43_spill] sm:$0xff]  ;;  %v4625_v31 = vld [vmem:[#allocation70_spill] sm:$0xff] }
 0x250   :  { %v1640_v60 = vpack.c.bf16 %v4602_v57, %v4601_v35  ;;  %v4635_v54 = vld [vmem:[#allocation215_spill] sm:$0xff]  ;;  %v4639_v57 = vld [vmem:[#allocation72_spill] sm:$0xff] }
 0x251   :  { %1553 = vmatpush1.bf16.msra.mxu0 %v1552_v21  ;;  %v4592_v21 = vld [vmem:[#allocation256_spill] sm:$0xff] }
 0x252   :  { %1555 = vmatprep.subr.bf16.mxu0 %v1554_v29  ;;  %1617 = vmatpush1.bf16.msra.mxu1 %v1616_v44  ;;  %v1628_v30 = vpack.c.bf16 %v4592_v21, %v4591_v12  ;;  %v4596_v29 = vld [vmem:[#allocation134_spill] sm:$0xff]  ;;  %v4629_v21 = vld [vmem:[#allocation88_spill] sm:$0xff] }
 0x253   :  { %1619 = vmatprep.subr.bf16.mxu1 %v1618_v18  ;;  %v1694_v39 = vpack.c.bf16 %v4596_v29, %v4595_v20  ;;  %v4606_v44 = vld [vmem:[#allocation54_spill] sm:$0xff]  ;;  %v4610_v18 = vld [vmem:[#allocation53_spill] sm:$0xff]  ;;  %v4633_v29 = vld [vmem:[#allocation87_spill] sm:$0xff] }
 0x254   :  { %v1642_v56 = vpack.c.bf16 %v4606_v44, %v4605_v7  ;;  %v1644_v27 = vpack.c.bf16 %v4610_v18, %v4609_v59  ;;  %v4643_v44 = vld [vmem:[#allocation233_spill] sm:$0xff] }
 0x255   :  { %1557 = vmatpush1.bf16.msra.mxu0 %v1556_v55  ;;  %v4600_v55 = vld [vmem:[#allocation19_spill] sm:$0xff]  ;;  %v4647_v18 = vld [vmem:[#allocation89_spill] sm:$0xff] }
 0x256   :  { %1559 = vmatprep.subr.bf16.mxu0 %v1558_v62  ;;  %1621 = vmatpush1.bf16.msra.mxu1 %v1620_v36  ;;  %v1696_v58 = vpack.c.bf16 %v4600_v55, %v4599_v47  ;;  %v4604_v62 = vld [vmem:[#allocation152_spill] sm:$0xff]  ;;  %v4637_v55 = vld [vmem:[#allocation106_spill] sm:$0xff] }
 0x257   :  { %1623 = vmatprep.subr.bf16.mxu1 %v1622_v10  ;;  %v1698_v63 = vpack.c.bf16 %v4604_v62, %v4603_v61  ;;  %v4614_v36 = vld [vmem:[#allocation64_spill] sm:$0xff]  ;;  %v4618_v10 = vld [vmem:[#allocation63_spill] sm:$0xff]  ;;  %v4641_v62 = vld [vmem:[#allocation105_spill] sm:$0xff] }
 0x258   :  { %v1646_v19 = vpack.c.bf16 %v4614_v36, %v4613_v26  ;;  %v1648_v9 = vpack.c.bf16 %v4618_v10, %v4617_v41  ;;  %v4651_v36 = vld [vmem:[#allocation251_spill] sm:$0xff] }
 0x259   :  { %1561 = vmatpush1.bf16.msra.mxu0 %v1560_v37  ;;  %v4608_v37 = vld [vmem:[#allocation33_spill] sm:$0xff]  ;;  %v4655_v10 = vld [vmem:[#allocation107_spill] sm:$0xff] }
 0x25a   :  { %1563 = vmatprep.subr.bf16.mxu0 %v1562_v0  ;;  %1625 = vmatpush1.bf16.msra.mxu1 %v1624_v1  ;;  %v1700_v8 = vpack.c.bf16 %v4608_v37, %v4607_v6  ;;  %v4612_v0 = vld [vmem:[#allocation170_spill] sm:$0xff]  ;;  %v4622_v1 = vld [vmem:[#allocation79_spill] sm:$0xff]  ;;  %v4645_v37 = vld [vmem:[#allocation124_spill] sm:$0xff] }
 0x25b   :  { %1627 = vmatprep.subr.bf16.mxu1 %v1626_v45  ;;  %v1702_v17 = vpack.c.bf16 %v4612_v0, %v4611_v32  ;;  %v1650_v13 = vpack.c.bf16 %v4622_v1, %v4621_v43  ;;  %v4626_v45 = vld [vmem:[#allocation78_spill] sm:$0xff]  ;;  %v4649_v0 = vld [vmem:[#allocation123_spill] sm:$0xff]  ;;  %v4659_v1 = vld [vmem:[#allocation160_spill] sm:$0xff] }
 0x25c   :  { %v1652_v2 = vpack.c.bf16 %v4626_v45, %v4625_v31  ;;  %v4663_v45 = vld [vmem:[#allocation178_spill] sm:$0xff] }
 0x25d   :  { %1565 = vmatpush1.bf16.msra.mxu0 %v1564_v42  ;;  %v4616_v42 = vld [vmem:[#allocation45_spill] sm:$0xff] }
 0x25e   :  { %1631 = vmatprep.subr.bf16.mxu0 %v1630_v28  ;;  %1629 = vmatpush1.bf16.msra.mxu1 %v1628_v30  ;;  %v1704_v40 = vpack.c.bf16 %v4616_v42, %v4615_v16  ;;  %v4620_v28 = vld [vmem:[#allocation188_spill] sm:$0xff]  ;;  %v4630_v30 = vld [vmem:[#allocation97_spill] sm:$0xff]  ;;  %v4653_v42 = vld [vmem:[#allocation142_spill] sm:$0xff] }
 0x25f   :  { %1695 = vmatprep.subr.bf16.mxu1 %v1694_v39  ;;  %v1706_v34 = vpack.c.bf16 %v4620_v28, %v4619_v4  ;;  %v1654_v46 = vpack.c.bf16 %v4630_v30, %v4629_v21  ;;  %v4634_v39 = vld [vmem:[#allocation96_spill] sm:$0xff]  ;;  %v4657_v28 = vld [vmem:[#allocation141_spill] sm:$0xff] }
 0x260   :  { %863 = vmatmul.mubr.f32.vlgmr.msra.gmra.mrb[0].mxu0 %v1835_v15  ;;  %v1656_v48 = vpack.c.bf16 %v4634_v39, %v4633_v29  ;;  %v4667_v30 = vld [vmem:[#allocation196_spill] sm:$0xff]  ;;  %v4671_v39 = vld [vmem:[#allocation214_spill] sm:$0xff] }
 0x261   :  { %1633 = vmatpush1.bf16.msra.mxu0 %v1632_v33  ;;  %1003 = vmatprep.mubr.f32.mxu0 %v1831_v52  ;;  %v4624_v33 = vld [vmem:[#allocation55_spill] sm:$0xff] }
 0x262   :  { %1635 = vmatprep.subr.bf16.mxu0 %v1634_v11  ;;  %933 = vmatmul.mubr.f32.vlgmr.msra.gmra.mrb[0].mxu1 %v1835_v15  ;;  %v1708_v25 = vpack.c.bf16 %v4624_v33, %v4623_v22  ;;  %v4628_v11 = vld [vmem:[#allocation206_spill] sm:$0xff]  ;;  %v4661_v33 = vld [vmem:[#allocation159_spill] sm:$0xff] }
 0x263   :  { %1697 = vmatpush3.bf16.msra.mxu1 %v1696_v58  ;;  %1074 = vmatprep.mubr.f32.mxu1 %v1831_v52  ;;  %v1710_v12 = vpack.c.bf16 %v4628_v11, %v4627_v3  ;;  %v4638_v58 = vld [vmem:[#allocation115_spill] sm:$0xff]  ;;  %v4665_v11 = vld [vmem:[#allocation177_spill] sm:$0xff] }
 0x264   :  { %1699 = vmatprep.subr.bf16.mxu1 %v1698_v63  ;;  %v1658_v35 = vpack.c.bf16 %v4638_v58, %v4637_v55  ;;  %v4642_v63 = vld [vmem:[#allocation114_spill] sm:$0xff]  ;;  %v4675_v58 = vld [vmem:[#allocation232_spill] sm:$0xff] }
 0x265   :  { %1637 = vmatpush1.bf16.msra.mxu0 %v1636_v53  ;;  %v4632_v53 = vld [vmem:[#allocation65_spill] sm:$0xff]  ;;  %v1660_v7 = vpack.c.bf16 %v4642_v63, %v4641_v62  ;;  %v4679_v63 = vld [vmem:[#allocation250_spill] sm:$0xff] }
 0x266   :  { %1639 = vmatprep.subr.bf16.mxu0 %v1638_v38  ;;  %v1712_v20 = vpack.c.bf16 %v4632_v53, %v4631_v51  ;;  %v4636_v38 = vld [vmem:[#allocation224_spill] sm:$0xff]  ;;  %v4669_v53 = vld [vmem:[#allocation195_spill] sm:$0xff] }
 0x267   :  { %1701 = vmatpush3.bf16.msra.mxu1 %v1700_v8  ;;  %v1714_v47 = vpack.c.bf16 %v4636_v38, %v4635_v54  ;;  %v4646_v8 = vld [vmem:[#allocation133_spill] sm:$0xff] }
 0x268   :  { %1703 = vmatprep.subr.bf16.mxu1 %v1702_v17  ;;  %v1662_v59 = vpack.c.bf16 %v4646_v8, %v4645_v37  ;;  %v4650_v17 = vld [vmem:[#allocation132_spill] sm:$0xff]  ;;  %v4673_v38 = vld [vmem:[#allocation213_spill] sm:$0xff] }
 0x269   :  { %1641 = vmatpush1.bf16.msra.mxu0 %v1640_v60  ;;  %v4640_v60 = vld [vmem:[#allocation80_spill] sm:$0xff]  ;;  %v1664_v26 = vpack.c.bf16 %v4650_v17, %v4649_v0 }
 0x26a   :  { %1643 = vmatprep.subr.bf16.mxu0 %v1642_v56  ;;  %v1716_v61 = vpack.c.bf16 %v4640_v60, %v4639_v57  ;;  %v4644_v56 = vld [vmem:[#allocation242_spill] sm:$0xff]  ;;  %v4677_v60 = vld [vmem:[#allocation231_spill] sm:$0xff] }
 0x26b   :  { %1705 = vmatpush3.bf16.msra.mxu1 %v1704_v40  ;;  %v1718_v6 = vpack.c.bf16 %v4644_v56, %v4643_v44  ;;  %v4654_v40 = vld [vmem:[#allocation151_spill] sm:$0xff]  ;;  %v4681_v56 = vld [vmem:[#allocation249_spill] sm:$0xff] }
 0x26c   :  { %1707 = vmatprep.subr.bf16.mxu1 %v1706_v34  ;;  %v1666_v41 = vpack.c.bf16 %v4654_v40, %v4653_v42  ;;  %v4658_v34 = vld [vmem:[#allocation150_spill] sm:$0xff] }
 0x26d   :  { %1645 = vmatpush1.bf16.msra.mxu0 %v1644_v27  ;;  %v4648_v27 = vld [vmem:[#allocation98_spill] sm:$0xff]  ;;  %v1668_v43 = vpack.c.bf16 %v4658_v34, %v4657_v28 }
 0x26e   :  { %1647 = vmatprep.subr.bf16.mxu0 %v1646_v19  ;;  %v1720_v32 = vpack.c.bf16 %v4648_v27, %v4647_v18  ;;  %v4652_v19 = vld [vmem:[#allocation260_spill] sm:$0xff] }
 0x26f   :  { %1709 = vmatpush3.bf16.msra.mxu1 %v1708_v25  ;;  %v1722_v16 = vpack.c.bf16 %v4652_v19, %v4651_v36  ;;  %v4662_v25 = vld [vmem:[#allocation168_spill] sm:$0xff] }
 0x270   :  { %1711 = vmatprep.subr.bf16.mxu1 %v1710_v12  ;;  %v1672_v31 = vpack.c.bf16 %v4662_v25, %v4661_v33  ;;  %v4666_v12 = vld [vmem:[#allocation186_spill] sm:$0xff]  ;;  %v1080_v33 = vstv %s3958_s0  ;;  %v1084_v25 = vstv %s1083_s10 }
 0x271   :  { %1649 = vmatpush1.bf16.msra.mxu0 %v1648_v9  ;;  %v4656_v9 = vld [vmem:[#allocation116_spill] sm:$0xff]  ;;  %v1676_v21 = vpack.c.bf16 %v4666_v12, %v4665_v11  ;;  %vm1081_vm4 = vcmp.ge.s32.totalorder %v3333_v23, %v1080_v33  ;;  %vm1085_vm5 = vcmp.eq.s32.totalorder %v1084_v25, 1 }
 0x272   :  { %1651 = vmatprep.subr.bf16.mxu0 %v1650_v13  ;;  %v1724_v4 = vpack.c.bf16 %v4656_v9, %v4655_v10  ;;  %v4660_v13 = vld [vmem:[#allocation169_spill] sm:$0xff]  ;;  %vm1086_vm6 = vmand %vm1081_vm4, %vm1085_vm5 }
 0x273   :  { %1713 = vmatpush3.bf16.msra.mxu1 %v1712_v20  ;;  %v1670_v22 = vpack.c.bf16 %v4660_v13, %v4659_v1  ;;  %v4670_v20 = vld [vmem:[#allocation204_spill] sm:$0xff]  ;;  %v4683_v1 = vld [vmem:[#allocation261_spill] sm:$0xff] }
 0x274   :  { %1715 = vmatprep.subr.bf16.mxu1 %v1714_v47  ;;  %v1680_v29 = vpack.c.bf16 %v4670_v20, %v4669_v53  ;;  %v4674_v47 = vld [vmem:[#allocation222_spill] sm:$0xff] }
 0x275   :  { %1653 = vmatpush1.bf16.msra.mxu0 %v1652_v2  ;;  %v4664_v2 = vld [vmem:[#allocation187_spill] sm:$0xff]  ;;  %v1684_v55 = vpack.c.bf16 %v4674_v47, %v4673_v38 }
 0x276   :  { %1655 = vmatprep.subr.bf16.mxu0 %v1654_v46  ;;  %v1674_v3 = vpack.c.bf16 %v4664_v2, %v4663_v45  ;;  %v4668_v46 = vld [vmem:[#allocation205_spill] sm:$0xff] }
 0x277   :  { %1717 = vmatpush3.bf16.msra.mxu1 %v1716_v61  ;;  %v1678_v51 = vpack.c.bf16 %v4668_v46, %v4667_v30  ;;  %v4678_v61 = vld [vmem:[#allocation240_spill] sm:$0xff] }
 0x278   :  { %1719 = vmatprep.subr.bf16.mxu1 %v1718_v6  ;;  %v1688_v62 = vpack.c.bf16 %v4678_v61, %v4677_v60  ;;  %v4682_v6 = vld [vmem:[#allocation258_spill] sm:$0xff] }
 0x279   :  { %1657 = vmatpush1.bf16.msra.mxu0 %v1656_v48  ;;  %v4672_v48 = vld [vmem:[#allocation223_spill] sm:$0xff]  ;;  %v1692_v37 = vpack.c.bf16 %v4682_v6, %v4681_v56 }
 0x27a   :  { %1659 = vmatprep.subr.bf16.mxu0 %v1658_v35  ;;  %v1682_v54 = vpack.c.bf16 %v4672_v48, %v4671_v39  ;;  %v4676_v35 = vld [vmem:[#allocation241_spill] sm:$0xff] }
 0x27b   :  { %1721 = vmatpush3.bf16.msra.mxu1 %v1720_v32  ;;  %v1686_v57 = vpack.c.bf16 %v4676_v35, %v4675_v58 }
 0x27c   :  { %1723 = vmatprep.subr.bf16.mxu1 %v1722_v16 }
 0x27d   :  { %1661 = vmatpush1.bf16.msra.mxu0 %v1660_v7  ;;  %v4680_v7 = vld [vmem:[#allocation259_spill] sm:$0xff] }
 0x27e   :  { %1663 = vmatprep.subr.bf16.mxu0 %v1662_v59  ;;  %v1690_v44 = vpack.c.bf16 %v4680_v7, %v4679_v63 }
 0x27f   :  { %1725 = vmatpush3.bf16.msra.mxu1 %v1724_v4 }
 0x281   :  { %1665 = vmatpush1.bf16.msra.mxu0 %v1664_v26 }
 0x282   :  { %1667 = vmatprep.subr.bf16.mxu0 %v1666_v41  ;;  %1075 = vmatmul.mubr.f32.vlgmr.msra.gmra.mrb[2].mxu1 %v1835_v15 }
 0x285   :  { %1669 = vmatpush1.bf16.msra.mxu0 %v1668_v43 }
 0x286   :  { %1671 = vmatprep.subr.bf16.mxu0 %v1670_v22 }
 0x289   :  { %1673 = vmatpush1.bf16.msra.mxu0 %v1672_v31 }
 0x28a   :  { %1675 = vmatprep.subr.bf16.mxu0 %v1674_v3 }
 0x28d   :  { %1677 = vmatpush1.bf16.msra.mxu0 %v1676_v21 }
 0x28e   :  { %1679 = vmatprep.subr.bf16.mxu0 %v1678_v51 }
 0x291   :  { %1681 = vmatpush1.bf16.msra.mxu0 %v1680_v29 }
 0x292   :  { %1683 = vmatprep.subr.bf16.mxu0 %v1682_v54 }
 0x295   :  { %1685 = vmatpush1.bf16.msra.mxu0 %v1684_v55 }
 0x296   :  { %1687 = vmatprep.subr.bf16.mxu0 %v1686_v57 }
 0x299   :  { %1689 = vmatpush1.bf16.msra.mxu0 %v1688_v62 }
 0x29a   :  { %1691 = vmatprep.subr.bf16.mxu0 %v1690_v44 }
 0x29d   :  { %1693 = vmatpush1.bf16.msra.mxu0 %v1692_v37 }
 0x2a0   :  { %1004 = vmatmul.mubr.f32.vlgmr.msra.gmra.mrb[2].mxu0 %v1835_v15 }
 0x333   :  { %v864_v8 = vpop.f32.mrb[0].mxu0 }
 0x334   :  { %v865_v59 = vpop.f32.mrb[1].mxu0 }
 0x335   :  { %v934_v18 = vpop.f32.mrb[0].mxu1  ;;  %v866_v36 = vadd.f32 %v865_v59, %v3341_v14 }
 0x336   :  { %v936_v27 = vpop.f32.mrb[1].mxu1  ;;  %v935_v42 = vadd.f32 %v934_v18, %v3343_v24 }
 0x355   :  { %v1211_v32 = vpop.f32.mrb[2].mxu1 }
 0x356   :  { %v1212_v0 = vpop.f32.mrb[3].mxu1 }
 0x357   :  { %v1213_v17 = vadd.f32 %v1212_v0, %v1211_v32 }
 0x359   :  { %v1077_v14 = vadd.f32 %v1213_v17, %v4683_v1 }
 0x373   :  { %v1005_v26 = vpop.f32.mrb[2].mxu0 }
 0x374   :  { %v1006_v19 = vadd.f32 %v1005_v26, %v3347_v49  ;;  %v1007_v16 = vpop.f32.mrb[3].mxu0  ;;  %v937_v49 = vadd.f32 %v936_v27, %v3345_v50 }
 0x375   :  { %v1008_v40 = vadd.f32 %v1007_v16, %v3349_v5 }
 0x376   :  { %v1087_v41 = vadd.f32 %v1006_v19, %v866_v36 }
 0x377   :  { %v1088_v10 = vadd.f32 %v1008_v40, %v935_v42 }
 0x378   :  { %v1139_v15 = vmul.f32 -1.442695, %v1087_v41 }
 0x379   :  { %v1140_v9 = vmul.f32 -1.442695, %v1088_v10 }
 0x37a   :  { %1787 = vpow2.f32 %v1139_v15 }
 0x37b   :  { %1789 = vpow2.f32 %v1140_v9 }
 0x384   :  { %v1788_v4 = vpop.eup %1787 }
 0x385   :  { %v1095_v28 = vadd.f32 1.0, %v1788_v4  ;;  %v1790_v34 = vpop.eup %1789 }
 0x386   :  { %v1096_v43 = vadd.f32 1.0, %v1790_v34 }
 0x387   :  { %1791 = vrcp.f32 %v1095_v28 }
 0x388   :  { %1793 = vrcp.f32 %v1096_v43 }
 0x391   :  { %v1792_v13 = vpop.eup %1791 }
 0x392   :  { %v1101_v24 = vmul.f32 %v1792_v13, %v1077_v14  ;;  %v1794_v22 = vpop.eup %1793 }
 0x393   :  { %v1104_v31 = vsub.f32 1.0, %v1794_v22  ;;  %v1106_v45 = vmul.f32 %v1831_v52, %v1794_v22 }
 0x394   :  { %v1102_v5 = vadd.f32 %v1101_v24, %v937_v49 }
 0x396   :  { %1795 = vtanh.f32 %v1102_v5 }
 0x3a0   :  { %v1796_v50 = vpop.eup %1795 }
 0x3a1   :  { %v1105_v2 = vmul.f32 %v1796_v50, %v1104_v31 }
 0x3a3   :  { %v1107_v3 = vadd.f32 %v1106_v45, %v1105_v2 }
 0x3a5   :  { %v1108_v11 = vsel %vm1086_vm6, %v1107_v3, %v1831_v52 }
 0x3a6   :  { %1109 = vst [vmem:[%s3961_s5] sm:$0xff] %v1108_v11 }

</bundles_post_ra>
